<compile_context>
chip_gen: v7x
topology: tpu7x:2x2x1
jax: 0.10.0
libtpu: 0.0.40
codegen_flags: <defaults>
</compile_context>

<pallas_src>
import functools

import jax
import jax.numpy as jnp
from jax.experimental import pallas as pl
from jax.experimental.pallas import tpu as pltpu

# ---- small CLIP-vision config (same structure as ViT-L/14, reduced dims) ----
IMAGE_SIZE = 32
PATCH_SIZE = 16
NUM_CHANNELS = 3
HIDDEN = 32
NUM_HEADS = 2
HEAD_DIM = HIDDEN // NUM_HEADS
INTERMEDIATE = 64
NUM_LAYERS = 2
PROJECTION_DIM = 32
PROJ_PAD = 128                                        # lane-dense padded projection width
EPS = 1e-5

GRID_HW = IMAGE_SIZE // PATCH_SIZE
NUM_PATCHES = GRID_HW * GRID_HW
SEQ = NUM_PATCHES + 1                                 # +1 for CLS token
PATCH_DIM = NUM_CHANNELS * PATCH_SIZE * PATCH_SIZE    # 768 = 6*128 -> lane aligned


def _layer_norm(x, g, b):
    mu = jnp.mean(x, axis=-1, keepdims=True)
    var = jnp.mean(jnp.square(x - mu), axis=-1, keepdims=True)
    return (x - mu) * jax.lax.rsqrt(var + EPS) * g + b


# ---------------------------- fused Pallas kernel ----------------------------
def _clip_tower_kernel(
    patches_ref,                    # (1, BSEQ, PATCH_DIM)  bf16, CLS rows are zero
    patch_w_ref,                    # (PATCH_DIM, HIDDEN)   bf16
    cls_pos_ref,                    # (BSEQ, HIDDEN)        f32  (cls emb folded into row 0 pos)
    attn_bias_ref,                  # (BSEQ, BSEQ)          f32  block-diagonal 0 / -1e9
    pre_g_ref, pre_b_ref,           # (1, HIDDEN)
    ln1_g_ref, ln1_b_ref,           # (L, 1, HIDDEN)
    qw_ref, qb_ref,                 # (L*NH, HIDDEN, HD) bf16 / (L*NH, 1, HD) f32
    kw_ref, kb_ref,
    vw_ref, vb_ref,
    ow_ref,                         # (L*NH, HD, HIDDEN)    bf16
    ob_ref,                         # (L, 1, HIDDEN)        f32
    ln2_g_ref, ln2_b_ref,           # (L, 1, HIDDEN)
    fc1_w_ref, fc1_b_ref,           # (L, HIDDEN, INT) bf16 / (L, 1, INT) f32
    fc2_w_ref, fc2_b_ref,           # (L, INT, HIDDEN) bf16 / (L, 1, HIDDEN) f32
    post_g_ref, post_b_ref,         # (1, HIDDEN)
    proj_w_ref,                     # (HIDDEN, PROJ_PAD)    bf16 (zero-padded lanes)
    out_ref,                        # (1, BSEQ, PROJ_PAD)   f32
):
    """One grid step == one batch chunk. Activations stay in vregs/VMEM until the final store."""
    f32 = jnp.float32
    bf16 = jnp.bfloat16
    scale = HEAD_DIM ** -0.5

    # --- patch-embedding conv (stride == kernel) as ONE bf16 MXU matmul; CLS row is a zero
    #     patch row, its embedding comes entirely from the cls+pos additive slab. ---
    h = jnp.dot(patches_ref[0], patch_w_ref[...], preferred_element_type=f32)   # (BSEQ, H)
    h = h + cls_pos_ref[...]

    # --- pre layernorm (f32) ---
    h = _layer_norm(h, pre_g_ref[...], pre_b_ref[...])

    bias = attn_bias_ref[...]                                                   # (BSEQ, BSEQ)

    for lyr in range(NUM_LAYERS):
        # ---- self-attention block: per-head pre-split weights, no lane slices/concats ----
        hn = _layer_norm(h, ln1_g_ref[lyr], ln1_b_ref[lyr])
        hn_b = hn.astype(bf16)
        attn = None
        for hh in range(NUM_HEADS):
            idx = lyr * NUM_HEADS + hh
            q = jnp.dot(hn_b, qw_ref[idx], preferred_element_type=f32) + qb_ref[idx]
            k = jnp.dot(hn_b, kw_ref[idx], preferred_element_type=f32) + kb_ref[idx]
            v = jnp.dot(hn_b, vw_ref[idx], preferred_element_type=f32) + vb_ref[idx]
            # scores: contract head dims (q @ k^T) + block-diagonal bias, softmax in f32
            s = jax.lax.dot_general(q * scale, k, (((1,), (1,)), ((), ())),
                                    preferred_element_type=f32) + bias          # (BSEQ, BSEQ)
            s = s - jnp.max(s, axis=-1, keepdims=True)
            p = jnp.exp(s)
            p = p * pl.reciprocal(jnp.sum(p, axis=-1, keepdims=True), approx=True)
            ctx = jnp.dot(p, v, preferred_element_type=f32)                     # (BSEQ, HD)
            # head "concat" folded into a sum of per-head output projections
            part = jnp.dot(ctx.astype(bf16), ow_ref[idx], preferred_element_type=f32)
            attn = part if attn is None else attn + part
        h = h + attn + ob_ref[lyr]

        # ---- MLP block (fc1 -> quick_gelu -> fc2), element-wise math in f32 ----
        hn = _layer_norm(h, ln2_g_ref[lyr], ln2_b_ref[lyr])
        hm = jnp.dot(hn.astype(bf16), fc1_w_ref[lyr], preferred_element_type=f32) + fc1_b_ref[lyr]
        hm = hm * jax.nn.sigmoid(1.702 * hm)                                    # quick_gelu
        h = h + jnp.dot(hm.astype(bf16), fc2_w_ref[lyr], preferred_element_type=f32) + fc2_b_ref[lyr]

    # ---- post-LN + visual projection over ALL rows (cheap at these dims); the wrapper keeps
    #      only the CLS row per image -> avoids a strided sublane gather in-kernel, and the
    #      128-lane padded projection makes the single output store lane-dense. ----
    hp = _layer_norm(h, post_g_ref[...], post_b_ref[...])
    emb = jnp.dot(hp.astype(bf16), proj_w_ref[...], preferred_element_type=f32)  # (BSEQ, PROJ_PAD)
    out_ref[...] = emb.reshape(out_ref.shape)


def _const_spec(arr):
    """Whole-array block, same block for every grid step (weights stay VMEM-resident)."""
    n = arr.ndim
    return pl.BlockSpec(arr.shape, lambda b, _n=n: (0,) * _n)


# ---------------------------- parameters ----------------------------
def init_params(key):
    def nrm(k, shape, scale=0.02):
        return (scale * jax.random.normal(k, shape)).astype(jnp.float32)

    keys = iter(jax.random.split(key, 8 + NUM_LAYERS * 16))
    p = {
        # conv2d(3 -> HIDDEN, kernel=patch, stride=patch, bias=False), PyTorch OIHW
        "patch_w": nrm(next(keys), (HIDDEN, NUM_CHANNELS, PATCH_SIZE, PATCH_SIZE)),
        "class_emb": nrm(next(keys), (HIDDEN,)),
        "pos_emb": nrm(next(keys), (SEQ, HIDDEN)),
        "pre_ln_g": jnp.ones((HIDDEN,), jnp.float32),
        "pre_ln_b": jnp.zeros((HIDDEN,), jnp.float32),
        "post_ln_g": jnp.ones((HIDDEN,), jnp.float32),
        "post_ln_b": jnp.zeros((HIDDEN,), jnp.float32),
        # visual_projection: Linear(HIDDEN -> PROJECTION_DIM, bias=False), stored as (in, out)
        "proj_w": nrm(next(keys), (HIDDEN, PROJECTION_DIM)),
        "layers": [],
    }
    for _ in range(NUM_LAYERS):
        lyr = {
            "ln1_g": jnp.ones((HIDDEN,), jnp.float32),
            "ln1_b": jnp.zeros((HIDDEN,), jnp.float32),
            "ln2_g": jnp.ones((HIDDEN,), jnp.float32),
            "ln2_b": jnp.zeros((HIDDEN,), jnp.float32),
            "q_w": nrm(next(keys), (HIDDEN, HIDDEN)), "q_b": nrm(next(keys), (HIDDEN,)),
            "k_w": nrm(next(keys), (HIDDEN, HIDDEN)), "k_b": nrm(next(keys), (HIDDEN,)),
            "v_w": nrm(next(keys), (HIDDEN, HIDDEN)), "v_b": nrm(next(keys), (HIDDEN,)),
            "o_w": nrm(next(keys), (HIDDEN, HIDDEN)), "o_b": nrm(next(keys), (HIDDEN,)),
            "fc1_w": nrm(next(keys), (HIDDEN, INTERMEDIATE)), "fc1_b": nrm(next(keys), (INTERMEDIATE,)),
            "fc2_w": nrm(next(keys), (INTERMEDIATE, HIDDEN)), "fc2_b": nrm(next(keys), (HIDDEN,)),
        }
        p["layers"].append(lyr)
    return p


# ---------------------------- forward pass ----------------------------
@functools.partial(jax.jit, static_argnames=("batch_chunks",))
def frozen_image_embedder_forward(params, pixel_values, batch_chunks=1):
    """pixel_values: (B, C, H, W) NCHW -> image_embeds: (B, PROJECTION_DIM).

    batch_chunks=1 (default): whole batch in one grid step (best on single-TC v5e/v6e).
    batch_chunks=2: two parallel steps, half the batch each (one per v7x TensorCore).
    """
    B = pixel_values.shape[0]
    assert B % batch_chunks == 0
    CB = B // batch_chunks
    BSEQ = CB * SEQ
    bf16 = jnp.bfloat16

    # im2col for the stride==kernel patch conv (one-time XLA layout glue).  The CLS slot is a
    # zero patch row, so the in-kernel concatenate disappears and M is a clean SEQ block.
    x = pixel_values.reshape(B, NUM_CHANNELS, GRID_HW, PATCH_SIZE, GRID_HW, PATCH_SIZE)
    patches = x.transpose(0, 2, 4, 1, 3, 5).reshape(B, NUM_PATCHES, PATCH_DIM)
    patches = jnp.concatenate(
        [jnp.zeros((B, 1, PATCH_DIM), patches.dtype), patches], axis=1)      # (B, SEQ, PD)
    patches = patches.reshape(batch_chunks, BSEQ, PATCH_DIM).astype(bf16)

    patch_w = params["patch_w"].reshape(HIDDEN, PATCH_DIM).T.astype(bf16)    # (PD, HIDDEN)

    # cls embedding folded into position row 0, tiled per image in the chunk
    cls_pos_one = params["pos_emb"].at[0].add(params["class_emb"])           # (SEQ, HIDDEN)
    cls_pos = jnp.tile(cls_pos_one, (CB, 1)).astype(jnp.float32)             # (BSEQ, HIDDEN)

    # block-diagonal attention bias keeps images independent when batch is folded into M
    img_id = jnp.repeat(jnp.arange(CB), SEQ)
    attn_bias = jnp.where(img_id[:, None] == img_id[None, :], 0.0, -1e9).astype(jnp.float32)

    # ---- pack per-layer weights into stacked, kernel-friendly slabs (once; frozen weights) ----
    L = params["layers"]
    HD = HEAD_DIM
    ln1_g = jnp.stack([l["ln1_g"].reshape(1, HIDDEN) for l in L])
    ln1_b = jnp.stack([l["ln1_b"].reshape(1, HIDDEN) for l in L])
    ln2_g = jnp.stack([l["ln2_g"].reshape(1, HIDDEN) for l in L])
    ln2_b = jnp.stack([l["ln2_b"].reshape(1, HIDDEN) for l in L])
    # per-head pre-split Q/K/V/O (no in-kernel 16-lane slices / lane concatenates)
    qw = jnp.stack([l["q_w"][:, h*HD:(h+1)*HD] for l in L for h in range(NUM_HEADS)]).astype(bf16)
    kw = jnp.stack([l["k_w"][:, h*HD:(h+1)*HD] for l in L for h in range(NUM_HEADS)]).astype(bf16)
    vw = jnp.stack([l["v_w"][:, h*HD:(h+1)*HD] for l in L for h in range(NUM_HEADS)]).astype(bf16)
    qb = jnp.stack([l["q_b"][h*HD:(h+1)*HD].reshape(1, HD) for l in L for h in range(NUM_HEADS)])
    kb = jnp.stack([l["k_b"][h*HD:(h+1)*HD].reshape(1, HD) for l in L for h in range(NUM_HEADS)])
    vb = jnp.stack([l["v_b"][h*HD:(h+1)*HD].reshape(1, HD) for l in L for h in range(NUM_HEADS)])
    ow = jnp.stack([l["o_w"][h*HD:(h+1)*HD, :] for l in L for h in range(NUM_HEADS)]).astype(bf16)
    ob = jnp.stack([l["o_b"].reshape(1, HIDDEN) for l in L])
    fc1_w = jnp.stack([l["fc1_w"] for l in L]).astype(bf16)
    fc1_b = jnp.stack([l["fc1_b"].reshape(1, INTERMEDIATE) for l in L])
    fc2_w = jnp.stack([l["fc2_w"] for l in L]).astype(bf16)
    fc2_b = jnp.stack([l["fc2_b"].reshape(1, HIDDEN) for l in L])

    pre_g = params["pre_ln_g"].reshape(1, HIDDEN)
    pre_b = params["pre_ln_b"].reshape(1, HIDDEN)
    post_g = params["post_ln_g"].reshape(1, HIDDEN)
    post_b = params["post_ln_b"].reshape(1, HIDDEN)

    # projection zero-padded to 128 output lanes -> single lane-dense output store
    proj_w_pad = jnp.zeros((HIDDEN, PROJ_PAD), jnp.float32)
    proj_w_pad = proj_w_pad.at[:, :PROJECTION_DIM].set(params["proj_w"]).astype(bf16)

    consts = [patch_w, cls_pos, attn_bias, pre_g, pre_b,
              ln1_g, ln1_b, qw, qb, kw, kb, vw, vb, ow, ob,
              ln2_g, ln2_b, fc1_w, fc1_b, fc2_w, fc2_b,
              post_g, post_b, proj_w_pad]

    in_specs = [pl.BlockSpec((1, BSEQ, PATCH_DIM), lambda b: (b, 0, 0))]
    in_specs += [_const_spec(c) for c in consts]

    out = pl.pallas_call(
        _clip_tower_kernel,
        out_shape=jax.ShapeDtypeStruct((batch_chunks, BSEQ, PROJ_PAD), jnp.float32),
        grid=(batch_chunks,),
        in_specs=in_specs,
        out_specs=pl.BlockSpec((1, BSEQ, PROJ_PAD), lambda b: (b, 0, 0)),
        compiler_params=pltpu.CompilerParams(
            dimension_semantics=("parallel",),   # chunks shard across v7x's 2 TensorCores
        ),
    )(patches, *consts)

    # keep only the CLS row of each image and the real projection lanes
    return out.reshape(B, SEQ, PROJ_PAD)[:, 0, :PROJECTION_DIM]


# ---------------------------- pure-JAX reference (for self-check) ----------------------------
def _reference_forward(params, pixel_values):
    B = pixel_values.shape[0]
    p = PATCH_SIZE
    x = pixel_values.reshape(B, NUM_CHANNELS, GRID_HW, p, GRID_HW, p)
    x = x.transpose(0, 2, 4, 1, 3, 5).reshape(B, NUM_PATCHES, PATCH_DIM)
    pe = x @ params["patch_w"].reshape(HIDDEN, PATCH_DIM).T
    cls = jnp.broadcast_to(params["class_emb"], (B, 1, HIDDEN))
    h = jnp.concatenate([cls, pe], axis=1) + params["pos_emb"][None]
    h = _layer_norm(h, params["pre_ln_g"], params["pre_ln_b"])
    scale = HEAD_DIM ** -0.5
    for l in params["layers"]:
        hn = _layer_norm(h, l["ln1_g"], l["ln1_b"])
        q = hn @ l["q_w"] + l["q_b"]
        k = hn @ l["k_w"] + l["k_b"]
        v = hn @ l["v_w"] + l["v_b"]

        def split(t):
            return t.reshape(B, SEQ, NUM_HEADS, HEAD_DIM).transpose(0, 2, 1, 3)

        s = jnp.einsum("bhqd,bhkd->bhqk", split(q) * scale, split(k))
        pr = jax.nn.softmax(s, axis=-1)
        ctx = jnp.einsum("bhqk,bhkd->bhqd", pr, split(v)).transpose(0, 2, 1, 3).reshape(B, SEQ, HIDDEN)
        h = h + ctx @ l["o_w"] + l["o_b"]

        hn = _layer_norm(h, l["ln2_g"], l["ln2_b"])
        hm = hn @ l["fc1_w"] + l["fc1_b"]
        hm = hm * jax.nn.sigmoid(1.702 * hm)
        h = h + hm @ l["fc2_w"] + l["fc2_b"]
    pooled = _layer_norm(h[:, 0, :], params["post_ln_g"], params["post_ln_b"])
    return pooled @ params["proj_w"]


if __name__ == "__main__":
    key = jax.random.PRNGKey(0)
    k_params, k_inputs = jax.random.split(key)
    params = init_params(k_params)

    B = 2
    pixel_values = jax.random.normal(
        k_inputs, (B, NUM_CHANNELS, IMAGE_SIZE, IMAGE_SIZE), dtype=jnp.float32
    )

    image_embeds = frozen_image_embedder_forward(params, pixel_values)
    image_embeds = jax.block_until_ready(image_embeds)

    assert image_embeds.shape == (B, PROJECTION_DIM), image_embeds.shape
    assert image_embeds.dtype == jnp.float32
    assert bool(jnp.all(jnp.isfinite(image_embeds)))

    # tolerance 2e-2: kernel uses bf16 weights/activations on the MXU (f32 accumulation,
    # f32 LN/softmax) and an approx-reciprocal softmax denominator vs. the f32 reference.
    ref = _reference_forward(params, pixel_values)
    assert bool(jnp.allclose(image_embeds, ref, atol=2e-2, rtol=2e-2)), (
        float(jnp.max(jnp.abs(image_embeds - ref))))
    print("KERNEL_OK")
</pallas_src>

<mosaic_0001>
module attributes {stable_mosaic.version = 11 : i64} {
  func.func @_clip_tower_kernel(%arg0: i32, %arg1: memref<1x10x768xbf16, #tpu.memory_space<vmem>>, %arg2: memref<768x32xbf16, #tpu.memory_space<vmem>>, %arg3: memref<10x32xf32, #tpu.memory_space<vmem>>, %arg4: memref<10x10xf32, #tpu.memory_space<vmem>>, %arg5: memref<1x32xf32, #tpu.memory_space<vmem>>, %arg6: memref<1x32xf32, #tpu.memory_space<vmem>>, %arg7: memref<2x1x32xf32, #tpu.memory_space<vmem>>, %arg8: memref<2x1x32xf32, #tpu.memory_space<vmem>>, %arg9: memref<4x32x16xbf16, #tpu.memory_space<vmem>>, %arg10: memref<4x1x16xf32, #tpu.memory_space<vmem>>, %arg11: memref<4x32x16xbf16, #tpu.memory_space<vmem>>, %arg12: memref<4x1x16xf32, #tpu.memory_space<vmem>>, %arg13: memref<4x32x16xbf16, #tpu.memory_space<vmem>>, %arg14: memref<4x1x16xf32, #tpu.memory_space<vmem>>, %arg15: memref<4x16x32xbf16, #tpu.memory_space<vmem>>, %arg16: memref<2x1x32xf32, #tpu.memory_space<vmem>>, %arg17: memref<2x1x32xf32, #tpu.memory_space<vmem>>, %arg18: memref<2x1x32xf32, #tpu.memory_space<vmem>>, %arg19: memref<2x32x64xbf16, #tpu.memory_space<vmem>>, %arg20: memref<2x1x64xf32, #tpu.memory_space<vmem>>, %arg21: memref<2x64x32xbf16, #tpu.memory_space<vmem>>, %arg22: memref<2x1x32xf32, #tpu.memory_space<vmem>>, %arg23: memref<1x32xf32, #tpu.memory_space<vmem>>, %arg24: memref<1x32xf32, #tpu.memory_space<vmem>>, %arg25: memref<32x128xbf16, #tpu.memory_space<vmem>>, %arg26: memref<1x10x128xf32, #tpu.memory_space<vmem>>) attributes {dimension_semantics = [#tpu.dimension_semantics<parallel>], iteration_bounds = array<i64: 1>, scalar_prefetch = 0 : i64, scratch_operands = 0 : i64, tpu.core_type = #tpu.core_type<tc>, window_params = [{transform_indices = @transform_0, window_bounds = array<i64: 1, 10, 768>}, {pipeline_mode = #tpu.pipeline_mode<synchronous>, transform_indices = @transform_1, window_bounds = array<i64: 768, 32>}, {pipeline_mode = #tpu.pipeline_mode<synchronous>, transform_indices = @transform_2, window_bounds = array<i64: 10, 32>}, {pipeline_mode = #tpu.pipeline_mode<synchronous>, transform_indices = @transform_3, window_bounds = array<i64: 10, 10>}, {pipeline_mode = #tpu.pipeline_mode<synchronous>, transform_indices = @transform_4, window_bounds = array<i64: 1, 32>}, {pipeline_mode = #tpu.pipeline_mode<synchronous>, transform_indices = @transform_5, window_bounds = array<i64: 1, 32>}, {pipeline_mode = #tpu.pipeline_mode<synchronous>, transform_indices = @transform_6, window_bounds = array<i64: 2, 1, 32>}, {pipeline_mode = #tpu.pipeline_mode<synchronous>, transform_indices = @transform_7, window_bounds = array<i64: 2, 1, 32>}, {pipeline_mode = #tpu.pipeline_mode<synchronous>, transform_indices = @transform_8, window_bounds = array<i64: 4, 32, 16>}, {pipeline_mode = #tpu.pipeline_mode<synchronous>, transform_indices = @transform_9, window_bounds = array<i64: 4, 1, 16>}, {pipeline_mode = #tpu.pipeline_mode<synchronous>, transform_indices = @transform_10, window_bounds = array<i64: 4, 32, 16>}, {pipeline_mode = #tpu.pipeline_mode<synchronous>, transform_indices = @transform_11, window_bounds = array<i64: 4, 1, 16>}, {pipeline_mode = #tpu.pipeline_mode<synchronous>, transform_indices = @transform_12, window_bounds = array<i64: 4, 32, 16>}, {pipeline_mode = #tpu.pipeline_mode<synchronous>, transform_indices = @transform_13, window_bounds = array<i64: 4, 1, 16>}, {pipeline_mode = #tpu.pipeline_mode<synchronous>, transform_indices = @transform_14, window_bounds = array<i64: 4, 16, 32>}, {pipeline_mode = #tpu.pipeline_mode<synchronous>, transform_indices = @transform_15, window_bounds = array<i64: 2, 1, 32>}, {pipeline_mode = #tpu.pipeline_mode<synchronous>, transform_indices = @transform_16, window_bounds = array<i64: 2, 1, 32>}, {pipeline_mode = #tpu.pipeline_mode<synchronous>, transform_indices = @transform_17, window_bounds = array<i64: 2, 1, 32>}, {pipeline_mode = #tpu.pipeline_mode<synchronous>, transform_indices = @transform_18, window_bounds = array<i64: 2, 32, 64>}, {pipeline_mode = #tpu.pipeline_mode<synchronous>, transform_indices = @transform_19, window_bounds = array<i64: 2, 1, 64>}, {pipeline_mode = #tpu.pipeline_mode<synchronous>, transform_indices = @transform_20, window_bounds = array<i64: 2, 64, 32>}, {pipeline_mode = #tpu.pipeline_mode<synchronous>, transform_indices = @transform_21, window_bounds = array<i64: 2, 1, 32>}, {pipeline_mode = #tpu.pipeline_mode<synchronous>, transform_indices = @transform_22, window_bounds = array<i64: 1, 32>}, {pipeline_mode = #tpu.pipeline_mode<synchronous>, transform_indices = @transform_23, window_bounds = array<i64: 1, 32>}, {pipeline_mode = #tpu.pipeline_mode<synchronous>, transform_indices = @transform_24, window_bounds = array<i64: 32, 128>}, {transform_indices = @transform_25, window_bounds = array<i64: 1, 10, 128>}]} {
    %c0 = arith.constant 0 : index
    %c0_0 = arith.constant 0 : index
    %c0_1 = arith.constant 0 : index
    %0 = vector.load %arg1[%c0, %c0_0, %c0_1] : memref<1x10x768xbf16, #tpu.memory_space<vmem>>, vector<1x10x768xbf16>
    %1 = vector.shape_cast %0 : vector<1x10x768xbf16> to vector<10x768xbf16>
    %c0_2 = arith.constant 0 : index
    %c0_3 = arith.constant 0 : index
    %2 = vector.load %arg2[%c0_2, %c0_3] : memref<768x32xbf16, #tpu.memory_space<vmem>>, vector<768x32xbf16>
    %cst = arith.constant dense<0.000000e+00> : vector<10x32xf32>
    %3 = tpu.matmul %1, %2, %cst {dimension_numbers = #tpu.dot_dimension_numbers<[1], [0], [0], [1], [0, 0, 1, 1], [], []>} : vector<10x768xbf16>, vector<768x32xbf16>, vector<10x32xf32> -> vector<10x32xf32>
    %c0_4 = arith.constant 0 : index
    %c0_5 = arith.constant 0 : index
    %4 = vector.load %arg3[%c0_4, %c0_5] : memref<10x32xf32, #tpu.memory_space<vmem>>, vector<10x32xf32>
    %5 = arith.addf %3, %4 : vector<10x32xf32>
    %c0_6 = arith.constant 0 : index
    %c0_7 = arith.constant 0 : index
    %6 = vector.load %arg5[%c0_6, %c0_7] : memref<1x32xf32, #tpu.memory_space<vmem>>, vector<1x32xf32>
    %c0_8 = arith.constant 0 : index
    %c0_9 = arith.constant 0 : index
    %7 = vector.load %arg6[%c0_8, %c0_9] : memref<1x32xf32, #tpu.memory_space<vmem>>, vector<1x32xf32>
    %cst_10 = arith.constant dense<0.000000e+00> : vector<10xf32>
    %8 = vector.multi_reduction <add>, %5, %cst_10 [1] : vector<10x32xf32> to vector<10xf32>
    %9 = vector.shape_cast %8 : vector<10xf32> to vector<10x1xf32>
    %cst_11 = arith.constant 3.200000e+01 : f32
    %10 = vector.broadcast %cst_11 : f32 to vector<10x1xf32>
    %11 = arith.divf %9, %10 : vector<10x1xf32>
    %12 = vector.broadcast %11 : vector<10x1xf32> to vector<10x32xf32>
    %13 = arith.subf %5, %12 : vector<10x32xf32>
    %14 = arith.mulf %13, %13 : vector<10x32xf32>
    %cst_12 = arith.constant dense<0.000000e+00> : vector<10xf32>
    %15 = vector.multi_reduction <add>, %14, %cst_12 [1] : vector<10x32xf32> to vector<10xf32>
    %16 = vector.shape_cast %15 : vector<10xf32> to vector<10x1xf32>
    %cst_13 = arith.constant 3.200000e+01 : f32
    %17 = vector.broadcast %cst_13 : f32 to vector<10x1xf32>
    %18 = arith.divf %16, %17 : vector<10x1xf32>
    %19 = vector.broadcast %11 : vector<10x1xf32> to vector<10x32xf32>
    %20 = arith.subf %5, %19 : vector<10x32xf32>
    %cst_14 = arith.constant 9.99999974E-6 : f32
    %21 = vector.broadcast %cst_14 : f32 to vector<10x1xf32>
    %22 = arith.addf %18, %21 : vector<10x1xf32>
    %23 = math.rsqrt %22 : vector<10x1xf32>
    %24 = vector.broadcast %23 : vector<10x1xf32> to vector<10x32xf32>
    %25 = arith.mulf %20, %24 : vector<10x32xf32>
    %26 = vector.broadcast %6 : vector<1x32xf32> to vector<10x32xf32>
    %27 = arith.mulf %25, %26 : vector<10x32xf32>
    %28 = vector.broadcast %7 : vector<1x32xf32> to vector<10x32xf32>
    %29 = arith.addf %27, %28 : vector<10x32xf32>
    %c0_15 = arith.constant 0 : index
    %c0_16 = arith.constant 0 : index
    %30 = vector.load %arg4[%c0_15, %c0_16] : memref<10x10xf32, #tpu.memory_space<vmem>>, vector<10x10xf32>
    %c0_17 = arith.constant 0 : index
    %c0_18 = arith.constant 0 : index
    %c0_19 = arith.constant 0 : index
    %31 = vector.load %arg7[%c0_17, %c0_18, %c0_19] : memref<2x1x32xf32, #tpu.memory_space<vmem>>, vector<1x1x32xf32>
    %32 = vector.shape_cast %31 : vector<1x1x32xf32> to vector<1x32xf32>
    %c0_20 = arith.constant 0 : index
    %c0_21 = arith.constant 0 : index
    %c0_22 = arith.constant 0 : index
    %33 = vector.load %arg8[%c0_20, %c0_21, %c0_22] : memref<2x1x32xf32, #tpu.memory_space<vmem>>, vector<1x1x32xf32>
    %34 = vector.shape_cast %33 : vector<1x1x32xf32> to vector<1x32xf32>
    %cst_23 = arith.constant dense<0.000000e+00> : vector<10xf32>
    %35 = vector.multi_reduction <add>, %29, %cst_23 [1] : vector<10x32xf32> to vector<10xf32>
    %36 = vector.shape_cast %35 : vector<10xf32> to vector<10x1xf32>
    %cst_24 = arith.constant 3.200000e+01 : f32
    %37 = vector.broadcast %cst_24 : f32 to vector<10x1xf32>
    %38 = arith.divf %36, %37 : vector<10x1xf32>
    %39 = vector.broadcast %38 : vector<10x1xf32> to vector<10x32xf32>
    %40 = arith.subf %29, %39 : vector<10x32xf32>
    %41 = arith.mulf %40, %40 : vector<10x32xf32>
    %cst_25 = arith.constant dense<0.000000e+00> : vector<10xf32>
    %42 = vector.multi_reduction <add>, %41, %cst_25 [1] : vector<10x32xf32> to vector<10xf32>
    %43 = vector.shape_cast %42 : vector<10xf32> to vector<10x1xf32>
    %cst_26 = arith.constant 3.200000e+01 : f32
    %44 = vector.broadcast %cst_26 : f32 to vector<10x1xf32>
    %45 = arith.divf %43, %44 : vector<10x1xf32>
    %46 = vector.broadcast %38 : vector<10x1xf32> to vector<10x32xf32>
    %47 = arith.subf %29, %46 : vector<10x32xf32>
    %cst_27 = arith.constant 9.99999974E-6 : f32
    %48 = vector.broadcast %cst_27 : f32 to vector<10x1xf32>
    %49 = arith.addf %45, %48 : vector<10x1xf32>
    %50 = math.rsqrt %49 : vector<10x1xf32>
    %51 = vector.broadcast %50 : vector<10x1xf32> to vector<10x32xf32>
    %52 = arith.mulf %47, %51 : vector<10x32xf32>
    %53 = vector.broadcast %32 : vector<1x32xf32> to vector<10x32xf32>
    %54 = arith.mulf %52, %53 : vector<10x32xf32>
    %55 = vector.broadcast %34 : vector<1x32xf32> to vector<10x32xf32>
    %56 = arith.addf %54, %55 : vector<10x32xf32>
    %57 = arith.truncf %56 : vector<10x32xf32> to vector<10x32xbf16>
    %c0_28 = arith.constant 0 : index
    %c0_29 = arith.constant 0 : index
    %c0_30 = arith.constant 0 : index
    %58 = vector.load %arg9[%c0_28, %c0_29, %c0_30] : memref<4x32x16xbf16, #tpu.memory_space<vmem>>, vector<1x32x16xbf16>
    %59 = vector.shape_cast %58 : vector<1x32x16xbf16> to vector<32x16xbf16>
    %cst_31 = arith.constant dense<0.000000e+00> : vector<10x16xf32>
    %60 = tpu.matmul %57, %59, %cst_31 {dimension_numbers = #tpu.dot_dimension_numbers<[1], [0], [0], [1], [0, 0, 1, 1], [], []>} : vector<10x32xbf16>, vector<32x16xbf16>, vector<10x16xf32> -> vector<10x16xf32>
    %c0_32 = arith.constant 0 : index
    %c0_33 = arith.constant 0 : index
    %c0_34 = arith.constant 0 : index
    %61 = vector.load %arg10[%c0_32, %c0_33, %c0_34] : memref<4x1x16xf32, #tpu.memory_space<vmem>>, vector<1x1x16xf32>
    %62 = vector.shape_cast %61 : vector<1x1x16xf32> to vector<1x16xf32>
    %63 = vector.broadcast %62 : vector<1x16xf32> to vector<10x16xf32>
    %64 = arith.addf %60, %63 : vector<10x16xf32>
    %c0_35 = arith.constant 0 : index
    %c0_36 = arith.constant 0 : index
    %c0_37 = arith.constant 0 : index
    %65 = vector.load %arg11[%c0_35, %c0_36, %c0_37] : memref<4x32x16xbf16, #tpu.memory_space<vmem>>, vector<1x32x16xbf16>
    %66 = vector.shape_cast %65 : vector<1x32x16xbf16> to vector<32x16xbf16>
    %cst_38 = arith.constant dense<0.000000e+00> : vector<10x16xf32>
    %67 = tpu.matmul %57, %66, %cst_38 {dimension_numbers = #tpu.dot_dimension_numbers<[1], [0], [0], [1], [0, 0, 1, 1], [], []>} : vector<10x32xbf16>, vector<32x16xbf16>, vector<10x16xf32> -> vector<10x16xf32>
    %c0_39 = arith.constant 0 : index
    %c0_40 = arith.constant 0 : index
    %c0_41 = arith.constant 0 : index
    %68 = vector.load %arg12[%c0_39, %c0_40, %c0_41] : memref<4x1x16xf32, #tpu.memory_space<vmem>>, vector<1x1x16xf32>
    %69 = vector.shape_cast %68 : vector<1x1x16xf32> to vector<1x16xf32>
    %70 = vector.broadcast %69 : vector<1x16xf32> to vector<10x16xf32>
    %71 = arith.addf %67, %70 : vector<10x16xf32>
    %c0_42 = arith.constant 0 : index
    %c0_43 = arith.constant 0 : index
    %c0_44 = arith.constant 0 : index
    %72 = vector.load %arg13[%c0_42, %c0_43, %c0_44] : memref<4x32x16xbf16, #tpu.memory_space<vmem>>, vector<1x32x16xbf16>
    %73 = vector.shape_cast %72 : vector<1x32x16xbf16> to vector<32x16xbf16>
    %cst_45 = arith.constant dense<0.000000e+00> : vector<10x16xf32>
    %74 = tpu.matmul %57, %73, %cst_45 {dimension_numbers = #tpu.dot_dimension_numbers<[1], [0], [0], [1], [0, 0, 1, 1], [], []>} : vector<10x32xbf16>, vector<32x16xbf16>, vector<10x16xf32> -> vector<10x16xf32>
    %c0_46 = arith.constant 0 : index
    %c0_47 = arith.constant 0 : index
    %c0_48 = arith.constant 0 : index
    %75 = vector.load %arg14[%c0_46, %c0_47, %c0_48] : memref<4x1x16xf32, #tpu.memory_space<vmem>>, vector<1x1x16xf32>
    %76 = vector.shape_cast %75 : vector<1x1x16xf32> to vector<1x16xf32>
    %77 = vector.broadcast %76 : vector<1x16xf32> to vector<10x16xf32>
    %78 = arith.addf %74, %77 : vector<10x16xf32>
    %cst_49 = arith.constant 2.500000e-01 : f32
    %79 = vector.broadcast %cst_49 : f32 to vector<10x16xf32>
    %80 = arith.mulf %64, %79 : vector<10x16xf32>
    %cst_50 = arith.constant dense<0.000000e+00> : vector<10x10xf32>
    %81 = tpu.matmul %80, %71, %cst_50 {dimension_numbers = #tpu.dot_dimension_numbers<[1], [1], [0], [0], [0, 0, 1, 0], [], []>} : vector<10x16xf32>, vector<10x16xf32>, vector<10x10xf32> -> vector<10x10xf32>
    %82 = arith.addf %81, %30 : vector<10x10xf32>
    %cst_51 = arith.constant dense<0xFF800000> : vector<10xf32>
    %83 = vector.multi_reduction <maximumf>, %82, %cst_51 [1] : vector<10x10xf32> to vector<10xf32>
    %84 = vector.shape_cast %83 : vector<10xf32> to vector<10x1xf32>
    %85 = vector.broadcast %84 : vector<10x1xf32> to vector<10x10xf32>
    %86 = arith.subf %82, %85 : vector<10x10xf32>
    %87 = math.exp %86 : vector<10x10xf32>
    %cst_52 = arith.constant dense<0.000000e+00> : vector<10xf32>
    %88 = vector.multi_reduction <add>, %87, %cst_52 [1] : vector<10x10xf32> to vector<10xf32>
    %89 = vector.shape_cast %88 : vector<10xf32> to vector<10x1xf32>
    %90 = tpu.reciprocal %89 {approx = true} : vector<10x1xf32> -> vector<10x1xf32>
    %91 = vector.broadcast %90 : vector<10x1xf32> to vector<10x10xf32>
    %92 = arith.mulf %87, %91 : vector<10x10xf32>
    %cst_53 = arith.constant dense<0.000000e+00> : vector<10x16xf32>
    %93 = tpu.matmul %92, %78, %cst_53 {dimension_numbers = #tpu.dot_dimension_numbers<[1], [0], [0], [1], [0, 0, 1, 1], [], []>} : vector<10x10xf32>, vector<10x16xf32>, vector<10x16xf32> -> vector<10x16xf32>
    %94 = arith.truncf %93 : vector<10x16xf32> to vector<10x16xbf16>
    %c0_54 = arith.constant 0 : index
    %c0_55 = arith.constant 0 : index
    %c0_56 = arith.constant 0 : index
    %95 = vector.load %arg15[%c0_54, %c0_55, %c0_56] : memref<4x16x32xbf16, #tpu.memory_space<vmem>>, vector<1x16x32xbf16>
    %96 = vector.shape_cast %95 : vector<1x16x32xbf16> to vector<16x32xbf16>
    %cst_57 = arith.constant dense<0.000000e+00> : vector<10x32xf32>
    %97 = tpu.matmul %94, %96, %cst_57 {dimension_numbers = #tpu.dot_dimension_numbers<[1], [0], [0], [1], [0, 0, 1, 1], [], []>} : vector<10x16xbf16>, vector<16x32xbf16>, vector<10x32xf32> -> vector<10x32xf32>
    %c1 = arith.constant 1 : index
    %c0_58 = arith.constant 0 : index
    %c0_59 = arith.constant 0 : index
    %98 = vector.load %arg9[%c1, %c0_58, %c0_59] : memref<4x32x16xbf16, #tpu.memory_space<vmem>>, vector<1x32x16xbf16>
    %99 = vector.shape_cast %98 : vector<1x32x16xbf16> to vector<32x16xbf16>
    %cst_60 = arith.constant dense<0.000000e+00> : vector<10x16xf32>
    %100 = tpu.matmul %57, %99, %cst_60 {dimension_numbers = #tpu.dot_dimension_numbers<[1], [0], [0], [1], [0, 0, 1, 1], [], []>} : vector<10x32xbf16>, vector<32x16xbf16>, vector<10x16xf32> -> vector<10x16xf32>
    %c1_61 = arith.constant 1 : index
    %c0_62 = arith.constant 0 : index
    %c0_63 = arith.constant 0 : index
    %101 = vector.load %arg10[%c1_61, %c0_62, %c0_63] : memref<4x1x16xf32, #tpu.memory_space<vmem>>, vector<1x1x16xf32>
    %102 = vector.shape_cast %101 : vector<1x1x16xf32> to vector<1x16xf32>
    %103 = vector.broadcast %102 : vector<1x16xf32> to vector<10x16xf32>
    %104 = arith.addf %100, %103 : vector<10x16xf32>
    %c1_64 = arith.constant 1 : index
    %c0_65 = arith.constant 0 : index
    %c0_66 = arith.constant 0 : index
    %105 = vector.load %arg11[%c1_64, %c0_65, %c0_66] : memref<4x32x16xbf16, #tpu.memory_space<vmem>>, vector<1x32x16xbf16>
    %106 = vector.shape_cast %105 : vector<1x32x16xbf16> to vector<32x16xbf16>
    %cst_67 = arith.constant dense<0.000000e+00> : vector<10x16xf32>
    %107 = tpu.matmul %57, %106, %cst_67 {dimension_numbers = #tpu.dot_dimension_numbers<[1], [0], [0], [1], [0, 0, 1, 1], [], []>} : vector<10x32xbf16>, vector<32x16xbf16>, vector<10x16xf32> -> vector<10x16xf32>
    %c1_68 = arith.constant 1 : index
    %c0_69 = arith.constant 0 : index
    %c0_70 = arith.constant 0 : index
    %108 = vector.load %arg12[%c1_68, %c0_69, %c0_70] : memref<4x1x16xf32, #tpu.memory_space<vmem>>, vector<1x1x16xf32>
    %109 = vector.shape_cast %108 : vector<1x1x16xf32> to vector<1x16xf32>
    %110 = vector.broadcast %109 : vector<1x16xf32> to vector<10x16xf32>
    %111 = arith.addf %107, %110 : vector<10x16xf32>
    %c1_71 = arith.constant 1 : index
    %c0_72 = arith.constant 0 : index
    %c0_73 = arith.constant 0 : index
    %112 = vector.load %arg13[%c1_71, %c0_72, %c0_73] : memref<4x32x16xbf16, #tpu.memory_space<vmem>>, vector<1x32x16xbf16>
    %113 = vector.shape_cast %112 : vector<1x32x16xbf16> to vector<32x16xbf16>
    %cst_74 = arith.constant dense<0.000000e+00> : vector<10x16xf32>
    %114 = tpu.matmul %57, %113, %cst_74 {dimension_numbers = #tpu.dot_dimension_numbers<[1], [0], [0], [1], [0, 0, 1, 1], [], []>} : vector<10x32xbf16>, vector<32x16xbf16>, vector<10x16xf32> -> vector<10x16xf32>
    %c1_75 = arith.constant 1 : index
    %c0_76 = arith.constant 0 : index
    %c0_77 = arith.constant 0 : index
    %115 = vector.load %arg14[%c1_75, %c0_76, %c0_77] : memref<4x1x16xf32, #tpu.memory_space<vmem>>, vector<1x1x16xf32>
    %116 = vector.shape_cast %115 : vector<1x1x16xf32> to vector<1x16xf32>
    %117 = vector.broadcast %116 : vector<1x16xf32> to vector<10x16xf32>
    %118 = arith.addf %114, %117 : vector<10x16xf32>
    %cst_78 = arith.constant 2.500000e-01 : f32
    %119 = vector.broadcast %cst_78 : f32 to vector<10x16xf32>
    %120 = arith.mulf %104, %119 : vector<10x16xf32>
    %cst_79 = arith.constant dense<0.000000e+00> : vector<10x10xf32>
    %121 = tpu.matmul %120, %111, %cst_79 {dimension_numbers = #tpu.dot_dimension_numbers<[1], [1], [0], [0], [0, 0, 1, 0], [], []>} : vector<10x16xf32>, vector<10x16xf32>, vector<10x10xf32> -> vector<10x10xf32>
    %122 = arith.addf %121, %30 : vector<10x10xf32>
    %cst_80 = arith.constant dense<0xFF800000> : vector<10xf32>
    %123 = vector.multi_reduction <maximumf>, %122, %cst_80 [1] : vector<10x10xf32> to vector<10xf32>
    %124 = vector.shape_cast %123 : vector<10xf32> to vector<10x1xf32>
    %125 = vector.broadcast %124 : vector<10x1xf32> to vector<10x10xf32>
    %126 = arith.subf %122, %125 : vector<10x10xf32>
    %127 = math.exp %126 : vector<10x10xf32>
    %cst_81 = arith.constant dense<0.000000e+00> : vector<10xf32>
    %128 = vector.multi_reduction <add>, %127, %cst_81 [1] : vector<10x10xf32> to vector<10xf32>
    %129 = vector.shape_cast %128 : vector<10xf32> to vector<10x1xf32>
    %130 = tpu.reciprocal %129 {approx = true} : vector<10x1xf32> -> vector<10x1xf32>
    %131 = vector.broadcast %130 : vector<10x1xf32> to vector<10x10xf32>
    %132 = arith.mulf %127, %131 : vector<10x10xf32>
    %cst_82 = arith.constant dense<0.000000e+00> : vector<10x16xf32>
    %133 = tpu.matmul %132, %118, %cst_82 {dimension_numbers = #tpu.dot_dimension_numbers<[1], [0], [0], [1], [0, 0, 1, 1], [], []>} : vector<10x10xf32>, vector<10x16xf32>, vector<10x16xf32> -> vector<10x16xf32>
    %134 = arith.truncf %133 : vector<10x16xf32> to vector<10x16xbf16>
    %c1_83 = arith.constant 1 : index
    %c0_84 = arith.constant 0 : index
    %c0_85 = arith.constant 0 : index
    %135 = vector.load %arg15[%c1_83, %c0_84, %c0_85] : memref<4x16x32xbf16, #tpu.memory_space<vmem>>, vector<1x16x32xbf16>
    %136 = vector.shape_cast %135 : vector<1x16x32xbf16> to vector<16x32xbf16>
    %cst_86 = arith.constant dense<0.000000e+00> : vector<10x32xf32>
    %137 = tpu.matmul %134, %136, %cst_86 {dimension_numbers = #tpu.dot_dimension_numbers<[1], [0], [0], [1], [0, 0, 1, 1], [], []>} : vector<10x16xbf16>, vector<16x32xbf16>, vector<10x32xf32> -> vector<10x32xf32>
    %138 = arith.addf %97, %137 : vector<10x32xf32>
    %139 = arith.addf %29, %138 : vector<10x32xf32>
    %c0_87 = arith.constant 0 : index
    %c0_88 = arith.constant 0 : index
    %c0_89 = arith.constant 0 : index
    %140 = vector.load %arg16[%c0_87, %c0_88, %c0_89] : memref<2x1x32xf32, #tpu.memory_space<vmem>>, vector<1x1x32xf32>
    %141 = vector.shape_cast %140 : vector<1x1x32xf32> to vector<1x32xf32>
    %142 = vector.broadcast %141 : vector<1x32xf32> to vector<10x32xf32>
    %143 = arith.addf %139, %142 : vector<10x32xf32>
    %c0_90 = arith.constant 0 : index
    %c0_91 = arith.constant 0 : index
    %c0_92 = arith.constant 0 : index
    %144 = vector.load %arg17[%c0_90, %c0_91, %c0_92] : memref<2x1x32xf32, #tpu.memory_space<vmem>>, vector<1x1x32xf32>
    %145 = vector.shape_cast %144 : vector<1x1x32xf32> to vector<1x32xf32>
    %c0_93 = arith.constant 0 : index
    %c0_94 = arith.constant 0 : index
    %c0_95 = arith.constant 0 : index
    %146 = vector.load %arg18[%c0_93, %c0_94, %c0_95] : memref<2x1x32xf32, #tpu.memory_space<vmem>>, vector<1x1x32xf32>
    %147 = vector.shape_cast %146 : vector<1x1x32xf32> to vector<1x32xf32>
    %cst_96 = arith.constant dense<0.000000e+00> : vector<10xf32>
    %148 = vector.multi_reduction <add>, %143, %cst_96 [1] : vector<10x32xf32> to vector<10xf32>
    %149 = vector.shape_cast %148 : vector<10xf32> to vector<10x1xf32>
    %cst_97 = arith.constant 3.200000e+01 : f32
    %150 = vector.broadcast %cst_97 : f32 to vector<10x1xf32>
    %151 = arith.divf %149, %150 : vector<10x1xf32>
    %152 = vector.broadcast %151 : vector<10x1xf32> to vector<10x32xf32>
    %153 = arith.subf %143, %152 : vector<10x32xf32>
    %154 = arith.mulf %153, %153 : vector<10x32xf32>
    %cst_98 = arith.constant dense<0.000000e+00> : vector<10xf32>
    %155 = vector.multi_reduction <add>, %154, %cst_98 [1] : vector<10x32xf32> to vector<10xf32>
    %156 = vector.shape_cast %155 : vector<10xf32> to vector<10x1xf32>
    %cst_99 = arith.constant 3.200000e+01 : f32
    %157 = vector.broadcast %cst_99 : f32 to vector<10x1xf32>
    %158 = arith.divf %156, %157 : vector<10x1xf32>
    %159 = vector.broadcast %151 : vector<10x1xf32> to vector<10x32xf32>
    %160 = arith.subf %143, %159 : vector<10x32xf32>
    %cst_100 = arith.constant 9.99999974E-6 : f32
    %161 = vector.broadcast %cst_100 : f32 to vector<10x1xf32>
    %162 = arith.addf %158, %161 : vector<10x1xf32>
    %163 = math.rsqrt %162 : vector<10x1xf32>
    %164 = vector.broadcast %163 : vector<10x1xf32> to vector<10x32xf32>
    %165 = arith.mulf %160, %164 : vector<10x32xf32>
    %166 = vector.broadcast %145 : vector<1x32xf32> to vector<10x32xf32>
    %167 = arith.mulf %165, %166 : vector<10x32xf32>
    %168 = vector.broadcast %147 : vector<1x32xf32> to vector<10x32xf32>
    %169 = arith.addf %167, %168 : vector<10x32xf32>
    %170 = arith.truncf %169 : vector<10x32xf32> to vector<10x32xbf16>
    %c0_101 = arith.constant 0 : index
    %c0_102 = arith.constant 0 : index
    %c0_103 = arith.constant 0 : index
    %171 = vector.load %arg19[%c0_101, %c0_102, %c0_103] : memref<2x32x64xbf16, #tpu.memory_space<vmem>>, vector<1x32x64xbf16>
    %172 = vector.shape_cast %171 : vector<1x32x64xbf16> to vector<32x64xbf16>
    %cst_104 = arith.constant dense<0.000000e+00> : vector<10x64xf32>
    %173 = tpu.matmul %170, %172, %cst_104 {dimension_numbers = #tpu.dot_dimension_numbers<[1], [0], [0], [1], [0, 0, 1, 1], [], []>} : vector<10x32xbf16>, vector<32x64xbf16>, vector<10x64xf32> -> vector<10x64xf32>
    %c0_105 = arith.constant 0 : index
    %c0_106 = arith.constant 0 : index
    %c0_107 = arith.constant 0 : index
    %174 = vector.load %arg20[%c0_105, %c0_106, %c0_107] : memref<2x1x64xf32, #tpu.memory_space<vmem>>, vector<1x1x64xf32>
    %175 = vector.shape_cast %174 : vector<1x1x64xf32> to vector<1x64xf32>
    %176 = vector.broadcast %175 : vector<1x64xf32> to vector<10x64xf32>
    %177 = arith.addf %173, %176 : vector<10x64xf32>
    %cst_108 = arith.constant 1.702000e+00 : f32
    %178 = vector.broadcast %cst_108 : f32 to vector<10x64xf32>
    %179 = arith.mulf %178, %177 : vector<10x64xf32>
    %180 = arith.negf %179 : vector<10x64xf32>
    %181 = math.exp %180 : vector<10x64xf32>
    %cst_109 = arith.constant 1.000000e+00 : f32
    %182 = vector.broadcast %cst_109 : f32 to vector<10x64xf32>
    %183 = arith.addf %182, %181 : vector<10x64xf32>
    %184 = arith.divf %182, %183 : vector<10x64xf32>
    %185 = arith.mulf %177, %184 : vector<10x64xf32>
    %186 = arith.truncf %185 : vector<10x64xf32> to vector<10x64xbf16>
    %c0_110 = arith.constant 0 : index
    %c0_111 = arith.constant 0 : index
    %c0_112 = arith.constant 0 : index
    %187 = vector.load %arg21[%c0_110, %c0_111, %c0_112] : memref<2x64x32xbf16, #tpu.memory_space<vmem>>, vector<1x64x32xbf16>
    %188 = vector.shape_cast %187 : vector<1x64x32xbf16> to vector<64x32xbf16>
    %cst_113 = arith.constant dense<0.000000e+00> : vector<10x32xf32>
    %189 = tpu.matmul %186, %188, %cst_113 {dimension_numbers = #tpu.dot_dimension_numbers<[1], [0], [0], [1], [0, 0, 1, 1], [], []>} : vector<10x64xbf16>, vector<64x32xbf16>, vector<10x32xf32> -> vector<10x32xf32>
    %190 = arith.addf %143, %189 : vector<10x32xf32>
    %c0_114 = arith.constant 0 : index
    %c0_115 = arith.constant 0 : index
    %c0_116 = arith.constant 0 : index
    %191 = vector.load %arg22[%c0_114, %c0_115, %c0_116] : memref<2x1x32xf32, #tpu.memory_space<vmem>>, vector<1x1x32xf32>
    %192 = vector.shape_cast %191 : vector<1x1x32xf32> to vector<1x32xf32>
    %193 = vector.broadcast %192 : vector<1x32xf32> to vector<10x32xf32>
    %194 = arith.addf %190, %193 : vector<10x32xf32>
    %c1_117 = arith.constant 1 : index
    %c0_118 = arith.constant 0 : index
    %c0_119 = arith.constant 0 : index
    %195 = vector.load %arg7[%c1_117, %c0_118, %c0_119] : memref<2x1x32xf32, #tpu.memory_space<vmem>>, vector<1x1x32xf32>
    %196 = vector.shape_cast %195 : vector<1x1x32xf32> to vector<1x32xf32>
    %c1_120 = arith.constant 1 : index
    %c0_121 = arith.constant 0 : index
    %c0_122 = arith.constant 0 : index
    %197 = vector.load %arg8[%c1_120, %c0_121, %c0_122] : memref<2x1x32xf32, #tpu.memory_space<vmem>>, vector<1x1x32xf32>
    %198 = vector.shape_cast %197 : vector<1x1x32xf32> to vector<1x32xf32>
    %cst_123 = arith.constant dense<0.000000e+00> : vector<10xf32>
    %199 = vector.multi_reduction <add>, %194, %cst_123 [1] : vector<10x32xf32> to vector<10xf32>
    %200 = vector.shape_cast %199 : vector<10xf32> to vector<10x1xf32>
    %cst_124 = arith.constant 3.200000e+01 : f32
    %201 = vector.broadcast %cst_124 : f32 to vector<10x1xf32>
    %202 = arith.divf %200, %201 : vector<10x1xf32>
    %203 = vector.broadcast %202 : vector<10x1xf32> to vector<10x32xf32>
    %204 = arith.subf %194, %203 : vector<10x32xf32>
    %205 = arith.mulf %204, %204 : vector<10x32xf32>
    %cst_125 = arith.constant dense<0.000000e+00> : vector<10xf32>
    %206 = vector.multi_reduction <add>, %205, %cst_125 [1] : vector<10x32xf32> to vector<10xf32>
    %207 = vector.shape_cast %206 : vector<10xf32> to vector<10x1xf32>
    %cst_126 = arith.constant 3.200000e+01 : f32
    %208 = vector.broadcast %cst_126 : f32 to vector<10x1xf32>
    %209 = arith.divf %207, %208 : vector<10x1xf32>
    %210 = vector.broadcast %202 : vector<10x1xf32> to vector<10x32xf32>
    %211 = arith.subf %194, %210 : vector<10x32xf32>
    %cst_127 = arith.constant 9.99999974E-6 : f32
    %212 = vector.broadcast %cst_127 : f32 to vector<10x1xf32>
    %213 = arith.addf %209, %212 : vector<10x1xf32>
    %214 = math.rsqrt %213 : vector<10x1xf32>
    %215 = vector.broadcast %214 : vector<10x1xf32> to vector<10x32xf32>
    %216 = arith.mulf %211, %215 : vector<10x32xf32>
    %217 = vector.broadcast %196 : vector<1x32xf32> to vector<10x32xf32>
    %218 = arith.mulf %216, %217 : vector<10x32xf32>
    %219 = vector.broadcast %198 : vector<1x32xf32> to vector<10x32xf32>
    %220 = arith.addf %218, %219 : vector<10x32xf32>
    %221 = arith.truncf %220 : vector<10x32xf32> to vector<10x32xbf16>
    %c2 = arith.constant 2 : index
    %c0_128 = arith.constant 0 : index
    %c0_129 = arith.constant 0 : index
    %222 = vector.load %arg9[%c2, %c0_128, %c0_129] : memref<4x32x16xbf16, #tpu.memory_space<vmem>>, vector<1x32x16xbf16>
    %223 = vector.shape_cast %222 : vector<1x32x16xbf16> to vector<32x16xbf16>
    %cst_130 = arith.constant dense<0.000000e+00> : vector<10x16xf32>
    %224 = tpu.matmul %221, %223, %cst_130 {dimension_numbers = #tpu.dot_dimension_numbers<[1], [0], [0], [1], [0, 0, 1, 1], [], []>} : vector<10x32xbf16>, vector<32x16xbf16>, vector<10x16xf32> -> vector<10x16xf32>
    %c2_131 = arith.constant 2 : index
    %c0_132 = arith.constant 0 : index
    %c0_133 = arith.constant 0 : index
    %225 = vector.load %arg10[%c2_131, %c0_132, %c0_133] : memref<4x1x16xf32, #tpu.memory_space<vmem>>, vector<1x1x16xf32>
    %226 = vector.shape_cast %225 : vector<1x1x16xf32> to vector<1x16xf32>
    %227 = vector.broadcast %226 : vector<1x16xf32> to vector<10x16xf32>
    %228 = arith.addf %224, %227 : vector<10x16xf32>
    %c2_134 = arith.constant 2 : index
    %c0_135 = arith.constant 0 : index
    %c0_136 = arith.constant 0 : index
    %229 = vector.load %arg11[%c2_134, %c0_135, %c0_136] : memref<4x32x16xbf16, #tpu.memory_space<vmem>>, vector<1x32x16xbf16>
    %230 = vector.shape_cast %229 : vector<1x32x16xbf16> to vector<32x16xbf16>
    %cst_137 = arith.constant dense<0.000000e+00> : vector<10x16xf32>
    %231 = tpu.matmul %221, %230, %cst_137 {dimension_numbers = #tpu.dot_dimension_numbers<[1], [0], [0], [1], [0, 0, 1, 1], [], []>} : vector<10x32xbf16>, vector<32x16xbf16>, vector<10x16xf32> -> vector<10x16xf32>
    %c2_138 = arith.constant 2 : index
    %c0_139 = arith.constant 0 : index
    %c0_140 = arith.constant 0 : index
    %232 = vector.load %arg12[%c2_138, %c0_139, %c0_140] : memref<4x1x16xf32, #tpu.memory_space<vmem>>, vector<1x1x16xf32>
    %233 = vector.shape_cast %232 : vector<1x1x16xf32> to vector<1x16xf32>
    %234 = vector.broadcast %233 : vector<1x16xf32> to vector<10x16xf32>
    %235 = arith.addf %231, %234 : vector<10x16xf32>
    %c2_141 = arith.constant 2 : index
    %c0_142 = arith.constant 0 : index
    %c0_143 = arith.constant 0 : index
    %236 = vector.load %arg13[%c2_141, %c0_142, %c0_143] : memref<4x32x16xbf16, #tpu.memory_space<vmem>>, vector<1x32x16xbf16>
    %237 = vector.shape_cast %236 : vector<1x32x16xbf16> to vector<32x16xbf16>
    %cst_144 = arith.constant dense<0.000000e+00> : vector<10x16xf32>
    %238 = tpu.matmul %221, %237, %cst_144 {dimension_numbers = #tpu.dot_dimension_numbers<[1], [0], [0], [1], [0, 0, 1, 1], [], []>} : vector<10x32xbf16>, vector<32x16xbf16>, vector<10x16xf32> -> vector<10x16xf32>
    %c2_145 = arith.constant 2 : index
    %c0_146 = arith.constant 0 : index
    %c0_147 = arith.constant 0 : index
    %239 = vector.load %arg14[%c2_145, %c0_146, %c0_147] : memref<4x1x16xf32, #tpu.memory_space<vmem>>, vector<1x1x16xf32>
    %240 = vector.shape_cast %239 : vector<1x1x16xf32> to vector<1x16xf32>
    %241 = vector.broadcast %240 : vector<1x16xf32> to vector<10x16xf32>
    %242 = arith.addf %238, %241 : vector<10x16xf32>
    %cst_148 = arith.constant 2.500000e-01 : f32
    %243 = vector.broadcast %cst_148 : f32 to vector<10x16xf32>
    %244 = arith.mulf %228, %243 : vector<10x16xf32>
    %cst_149 = arith.constant dense<0.000000e+00> : vector<10x10xf32>
    %245 = tpu.matmul %244, %235, %cst_149 {dimension_numbers = #tpu.dot_dimension_numbers<[1], [1], [0], [0], [0, 0, 1, 0], [], []>} : vector<10x16xf32>, vector<10x16xf32>, vector<10x10xf32> -> vector<10x10xf32>
    %246 = arith.addf %245, %30 : vector<10x10xf32>
    %cst_150 = arith.constant dense<0xFF800000> : vector<10xf32>
    %247 = vector.multi_reduction <maximumf>, %246, %cst_150 [1] : vector<10x10xf32> to vector<10xf32>
    %248 = vector.shape_cast %247 : vector<10xf32> to vector<10x1xf32>
    %249 = vector.broadcast %248 : vector<10x1xf32> to vector<10x10xf32>
    %250 = arith.subf %246, %249 : vector<10x10xf32>
    %251 = math.exp %250 : vector<10x10xf32>
    %cst_151 = arith.constant dense<0.000000e+00> : vector<10xf32>
    %252 = vector.multi_reduction <add>, %251, %cst_151 [1] : vector<10x10xf32> to vector<10xf32>
    %253 = vector.shape_cast %252 : vector<10xf32> to vector<10x1xf32>
    %254 = tpu.reciprocal %253 {approx = true} : vector<10x1xf32> -> vector<10x1xf32>
    %255 = vector.broadcast %254 : vector<10x1xf32> to vector<10x10xf32>
    %256 = arith.mulf %251, %255 : vector<10x10xf32>
    %cst_152 = arith.constant dense<0.000000e+00> : vector<10x16xf32>
    %257 = tpu.matmul %256, %242, %cst_152 {dimension_numbers = #tpu.dot_dimension_numbers<[1], [0], [0], [1], [0, 0, 1, 1], [], []>} : vector<10x10xf32>, vector<10x16xf32>, vector<10x16xf32> -> vector<10x16xf32>
    %258 = arith.truncf %257 : vector<10x16xf32> to vector<10x16xbf16>
    %c2_153 = arith.constant 2 : index
    %c0_154 = arith.constant 0 : index
    %c0_155 = arith.constant 0 : index
    %259 = vector.load %arg15[%c2_153, %c0_154, %c0_155] : memref<4x16x32xbf16, #tpu.memory_space<vmem>>, vector<1x16x32xbf16>
    %260 = vector.shape_cast %259 : vector<1x16x32xbf16> to vector<16x32xbf16>
    %cst_156 = arith.constant dense<0.000000e+00> : vector<10x32xf32>
    %261 = tpu.matmul %258, %260, %cst_156 {dimension_numbers = #tpu.dot_dimension_numbers<[1], [0], [0], [1], [0, 0, 1, 1], [], []>} : vector<10x16xbf16>, vector<16x32xbf16>, vector<10x32xf32> -> vector<10x32xf32>
    %c3 = arith.constant 3 : index
    %c0_157 = arith.constant 0 : index
    %c0_158 = arith.constant 0 : index
    %262 = vector.load %arg9[%c3, %c0_157, %c0_158] : memref<4x32x16xbf16, #tpu.memory_space<vmem>>, vector<1x32x16xbf16>
    %263 = vector.shape_cast %262 : vector<1x32x16xbf16> to vector<32x16xbf16>
    %cst_159 = arith.constant dense<0.000000e+00> : vector<10x16xf32>
    %264 = tpu.matmul %221, %263, %cst_159 {dimension_numbers = #tpu.dot_dimension_numbers<[1], [0], [0], [1], [0, 0, 1, 1], [], []>} : vector<10x32xbf16>, vector<32x16xbf16>, vector<10x16xf32> -> vector<10x16xf32>
    %c3_160 = arith.constant 3 : index
    %c0_161 = arith.constant 0 : index
    %c0_162 = arith.constant 0 : index
    %265 = vector.load %arg10[%c3_160, %c0_161, %c0_162] : memref<4x1x16xf32, #tpu.memory_space<vmem>>, vector<1x1x16xf32>
    %266 = vector.shape_cast %265 : vector<1x1x16xf32> to vector<1x16xf32>
    %267 = vector.broadcast %266 : vector<1x16xf32> to vector<10x16xf32>
    %268 = arith.addf %264, %267 : vector<10x16xf32>
    %c3_163 = arith.constant 3 : index
    %c0_164 = arith.constant 0 : index
    %c0_165 = arith.constant 0 : index
    %269 = vector.load %arg11[%c3_163, %c0_164, %c0_165] : memref<4x32x16xbf16, #tpu.memory_space<vmem>>, vector<1x32x16xbf16>
    %270 = vector.shape_cast %269 : vector<1x32x16xbf16> to vector<32x16xbf16>
    %cst_166 = arith.constant dense<0.000000e+00> : vector<10x16xf32>
    %271 = tpu.matmul %221, %270, %cst_166 {dimension_numbers = #tpu.dot_dimension_numbers<[1], [0], [0], [1], [0, 0, 1, 1], [], []>} : vector<10x32xbf16>, vector<32x16xbf16>, vector<10x16xf32> -> vector<10x16xf32>
    %c3_167 = arith.constant 3 : index
    %c0_168 = arith.constant 0 : index
    %c0_169 = arith.constant 0 : index
    %272 = vector.load %arg12[%c3_167, %c0_168, %c0_169] : memref<4x1x16xf32, #tpu.memory_space<vmem>>, vector<1x1x16xf32>
    %273 = vector.shape_cast %272 : vector<1x1x16xf32> to vector<1x16xf32>
    %274 = vector.broadcast %273 : vector<1x16xf32> to vector<10x16xf32>
    %275 = arith.addf %271, %274 : vector<10x16xf32>
    %c3_170 = arith.constant 3 : index
    %c0_171 = arith.constant 0 : index
    %c0_172 = arith.constant 0 : index
    %276 = vector.load %arg13[%c3_170, %c0_171, %c0_172] : memref<4x32x16xbf16, #tpu.memory_space<vmem>>, vector<1x32x16xbf16>
    %277 = vector.shape_cast %276 : vector<1x32x16xbf16> to vector<32x16xbf16>
    %cst_173 = arith.constant dense<0.000000e+00> : vector<10x16xf32>
    %278 = tpu.matmul %221, %277, %cst_173 {dimension_numbers = #tpu.dot_dimension_numbers<[1], [0], [0], [1], [0, 0, 1, 1], [], []>} : vector<10x32xbf16>, vector<32x16xbf16>, vector<10x16xf32> -> vector<10x16xf32>
    %c3_174 = arith.constant 3 : index
    %c0_175 = arith.constant 0 : index
    %c0_176 = arith.constant 0 : index
    %279 = vector.load %arg14[%c3_174, %c0_175, %c0_176] : memref<4x1x16xf32, #tpu.memory_space<vmem>>, vector<1x1x16xf32>
    %280 = vector.shape_cast %279 : vector<1x1x16xf32> to vector<1x16xf32>
    %281 = vector.broadcast %280 : vector<1x16xf32> to vector<10x16xf32>
    %282 = arith.addf %278, %281 : vector<10x16xf32>
    %cst_177 = arith.constant 2.500000e-01 : f32
    %283 = vector.broadcast %cst_177 : f32 to vector<10x16xf32>
    %284 = arith.mulf %268, %283 : vector<10x16xf32>
    %cst_178 = arith.constant dense<0.000000e+00> : vector<10x10xf32>
    %285 = tpu.matmul %284, %275, %cst_178 {dimension_numbers = #tpu.dot_dimension_numbers<[1], [1], [0], [0], [0, 0, 1, 0], [], []>} : vector<10x16xf32>, vector<10x16xf32>, vector<10x10xf32> -> vector<10x10xf32>
    %286 = arith.addf %285, %30 : vector<10x10xf32>
    %cst_179 = arith.constant dense<0xFF800000> : vector<10xf32>
    %287 = vector.multi_reduction <maximumf>, %286, %cst_179 [1] : vector<10x10xf32> to vector<10xf32>
    %288 = vector.shape_cast %287 : vector<10xf32> to vector<10x1xf32>
    %289 = vector.broadcast %288 : vector<10x1xf32> to vector<10x10xf32>
    %290 = arith.subf %286, %289 : vector<10x10xf32>
    %291 = math.exp %290 : vector<10x10xf32>
    %cst_180 = arith.constant dense<0.000000e+00> : vector<10xf32>
    %292 = vector.multi_reduction <add>, %291, %cst_180 [1] : vector<10x10xf32> to vector<10xf32>
    %293 = vector.shape_cast %292 : vector<10xf32> to vector<10x1xf32>
    %294 = tpu.reciprocal %293 {approx = true} : vector<10x1xf32> -> vector<10x1xf32>
    %295 = vector.broadcast %294 : vector<10x1xf32> to vector<10x10xf32>
    %296 = arith.mulf %291, %295 : vector<10x10xf32>
    %cst_181 = arith.constant dense<0.000000e+00> : vector<10x16xf32>
    %297 = tpu.matmul %296, %282, %cst_181 {dimension_numbers = #tpu.dot_dimension_numbers<[1], [0], [0], [1], [0, 0, 1, 1], [], []>} : vector<10x10xf32>, vector<10x16xf32>, vector<10x16xf32> -> vector<10x16xf32>
    %298 = arith.truncf %297 : vector<10x16xf32> to vector<10x16xbf16>
    %c3_182 = arith.constant 3 : index
    %c0_183 = arith.constant 0 : index
    %c0_184 = arith.constant 0 : index
    %299 = vector.load %arg15[%c3_182, %c0_183, %c0_184] : memref<4x16x32xbf16, #tpu.memory_space<vmem>>, vector<1x16x32xbf16>
    %300 = vector.shape_cast %299 : vector<1x16x32xbf16> to vector<16x32xbf16>
    %cst_185 = arith.constant dense<0.000000e+00> : vector<10x32xf32>
    %301 = tpu.matmul %298, %300, %cst_185 {dimension_numbers = #tpu.dot_dimension_numbers<[1], [0], [0], [1], [0, 0, 1, 1], [], []>} : vector<10x16xbf16>, vector<16x32xbf16>, vector<10x32xf32> -> vector<10x32xf32>
    %302 = arith.addf %261, %301 : vector<10x32xf32>
    %303 = arith.addf %194, %302 : vector<10x32xf32>
    %c1_186 = arith.constant 1 : index
    %c0_187 = arith.constant 0 : index
    %c0_188 = arith.constant 0 : index
    %304 = vector.load %arg16[%c1_186, %c0_187, %c0_188] : memref<2x1x32xf32, #tpu.memory_space<vmem>>, vector<1x1x32xf32>
    %305 = vector.shape_cast %304 : vector<1x1x32xf32> to vector<1x32xf32>
    %306 = vector.broadcast %305 : vector<1x32xf32> to vector<10x32xf32>
    %307 = arith.addf %303, %306 : vector<10x32xf32>
    %c1_189 = arith.constant 1 : index
    %c0_190 = arith.constant 0 : index
    %c0_191 = arith.constant 0 : index
    %308 = vector.load %arg17[%c1_189, %c0_190, %c0_191] : memref<2x1x32xf32, #tpu.memory_space<vmem>>, vector<1x1x32xf32>
    %309 = vector.shape_cast %308 : vector<1x1x32xf32> to vector<1x32xf32>
    %c1_192 = arith.constant 1 : index
    %c0_193 = arith.constant 0 : index
    %c0_194 = arith.constant 0 : index
    %310 = vector.load %arg18[%c1_192, %c0_193, %c0_194] : memref<2x1x32xf32, #tpu.memory_space<vmem>>, vector<1x1x32xf32>
    %311 = vector.shape_cast %310 : vector<1x1x32xf32> to vector<1x32xf32>
    %cst_195 = arith.constant dense<0.000000e+00> : vector<10xf32>
    %312 = vector.multi_reduction <add>, %307, %cst_195 [1] : vector<10x32xf32> to vector<10xf32>
    %313 = vector.shape_cast %312 : vector<10xf32> to vector<10x1xf32>
    %cst_196 = arith.constant 3.200000e+01 : f32
    %314 = vector.broadcast %cst_196 : f32 to vector<10x1xf32>
    %315 = arith.divf %313, %314 : vector<10x1xf32>
    %316 = vector.broadcast %315 : vector<10x1xf32> to vector<10x32xf32>
    %317 = arith.subf %307, %316 : vector<10x32xf32>
    %318 = arith.mulf %317, %317 : vector<10x32xf32>
    %cst_197 = arith.constant dense<0.000000e+00> : vector<10xf32>
    %319 = vector.multi_reduction <add>, %318, %cst_197 [1] : vector<10x32xf32> to vector<10xf32>
    %320 = vector.shape_cast %319 : vector<10xf32> to vector<10x1xf32>
    %cst_198 = arith.constant 3.200000e+01 : f32
    %321 = vector.broadcast %cst_198 : f32 to vector<10x1xf32>
    %322 = arith.divf %320, %321 : vector<10x1xf32>
    %323 = vector.broadcast %315 : vector<10x1xf32> to vector<10x32xf32>
    %324 = arith.subf %307, %323 : vector<10x32xf32>
    %cst_199 = arith.constant 9.99999974E-6 : f32
    %325 = vector.broadcast %cst_199 : f32 to vector<10x1xf32>
    %326 = arith.addf %322, %325 : vector<10x1xf32>
    %327 = math.rsqrt %326 : vector<10x1xf32>
    %328 = vector.broadcast %327 : vector<10x1xf32> to vector<10x32xf32>
    %329 = arith.mulf %324, %328 : vector<10x32xf32>
    %330 = vector.broadcast %309 : vector<1x32xf32> to vector<10x32xf32>
    %331 = arith.mulf %329, %330 : vector<10x32xf32>
    %332 = vector.broadcast %311 : vector<1x32xf32> to vector<10x32xf32>
    %333 = arith.addf %331, %332 : vector<10x32xf32>
    %334 = arith.truncf %333 : vector<10x32xf32> to vector<10x32xbf16>
    %c1_200 = arith.constant 1 : index
    %c0_201 = arith.constant 0 : index
    %c0_202 = arith.constant 0 : index
    %335 = vector.load %arg19[%c1_200, %c0_201, %c0_202] : memref<2x32x64xbf16, #tpu.memory_space<vmem>>, vector<1x32x64xbf16>
    %336 = vector.shape_cast %335 : vector<1x32x64xbf16> to vector<32x64xbf16>
    %cst_203 = arith.constant dense<0.000000e+00> : vector<10x64xf32>
    %337 = tpu.matmul %334, %336, %cst_203 {dimension_numbers = #tpu.dot_dimension_numbers<[1], [0], [0], [1], [0, 0, 1, 1], [], []>} : vector<10x32xbf16>, vector<32x64xbf16>, vector<10x64xf32> -> vector<10x64xf32>
    %c1_204 = arith.constant 1 : index
    %c0_205 = arith.constant 0 : index
    %c0_206 = arith.constant 0 : index
    %338 = vector.load %arg20[%c1_204, %c0_205, %c0_206] : memref<2x1x64xf32, #tpu.memory_space<vmem>>, vector<1x1x64xf32>
    %339 = vector.shape_cast %338 : vector<1x1x64xf32> to vector<1x64xf32>
    %340 = vector.broadcast %339 : vector<1x64xf32> to vector<10x64xf32>
    %341 = arith.addf %337, %340 : vector<10x64xf32>
    %cst_207 = arith.constant 1.702000e+00 : f32
    %342 = vector.broadcast %cst_207 : f32 to vector<10x64xf32>
    %343 = arith.mulf %342, %341 : vector<10x64xf32>
    %344 = arith.negf %343 : vector<10x64xf32>
    %345 = math.exp %344 : vector<10x64xf32>
    %cst_208 = arith.constant 1.000000e+00 : f32
    %346 = vector.broadcast %cst_208 : f32 to vector<10x64xf32>
    %347 = arith.addf %346, %345 : vector<10x64xf32>
    %348 = arith.divf %346, %347 : vector<10x64xf32>
    %349 = arith.mulf %341, %348 : vector<10x64xf32>
    %350 = arith.truncf %349 : vector<10x64xf32> to vector<10x64xbf16>
    %c1_209 = arith.constant 1 : index
    %c0_210 = arith.constant 0 : index
    %c0_211 = arith.constant 0 : index
    %351 = vector.load %arg21[%c1_209, %c0_210, %c0_211] : memref<2x64x32xbf16, #tpu.memory_space<vmem>>, vector<1x64x32xbf16>
    %352 = vector.shape_cast %351 : vector<1x64x32xbf16> to vector<64x32xbf16>
    %cst_212 = arith.constant dense<0.000000e+00> : vector<10x32xf32>
    %353 = tpu.matmul %350, %352, %cst_212 {dimension_numbers = #tpu.dot_dimension_numbers<[1], [0], [0], [1], [0, 0, 1, 1], [], []>} : vector<10x64xbf16>, vector<64x32xbf16>, vector<10x32xf32> -> vector<10x32xf32>
    %354 = arith.addf %307, %353 : vector<10x32xf32>
    %c1_213 = arith.constant 1 : index
    %c0_214 = arith.constant 0 : index
    %c0_215 = arith.constant 0 : index
    %355 = vector.load %arg22[%c1_213, %c0_214, %c0_215] : memref<2x1x32xf32, #tpu.memory_space<vmem>>, vector<1x1x32xf32>
    %356 = vector.shape_cast %355 : vector<1x1x32xf32> to vector<1x32xf32>
    %357 = vector.broadcast %356 : vector<1x32xf32> to vector<10x32xf32>
    %358 = arith.addf %354, %357 : vector<10x32xf32>
    %c0_216 = arith.constant 0 : index
    %c0_217 = arith.constant 0 : index
    %359 = vector.load %arg23[%c0_216, %c0_217] : memref<1x32xf32, #tpu.memory_space<vmem>>, vector<1x32xf32>
    %c0_218 = arith.constant 0 : index
    %c0_219 = arith.constant 0 : index
    %360 = vector.load %arg24[%c0_218, %c0_219] : memref<1x32xf32, #tpu.memory_space<vmem>>, vector<1x32xf32>
    %cst_220 = arith.constant dense<0.000000e+00> : vector<10xf32>
    %361 = vector.multi_reduction <add>, %358, %cst_220 [1] : vector<10x32xf32> to vector<10xf32>
    %362 = vector.shape_cast %361 : vector<10xf32> to vector<10x1xf32>
    %cst_221 = arith.constant 3.200000e+01 : f32
    %363 = vector.broadcast %cst_221 : f32 to vector<10x1xf32>
    %364 = arith.divf %362, %363 : vector<10x1xf32>
    %365 = vector.broadcast %364 : vector<10x1xf32> to vector<10x32xf32>
    %366 = arith.subf %358, %365 : vector<10x32xf32>
    %367 = arith.mulf %366, %366 : vector<10x32xf32>
    %cst_222 = arith.constant dense<0.000000e+00> : vector<10xf32>
    %368 = vector.multi_reduction <add>, %367, %cst_222 [1] : vector<10x32xf32> to vector<10xf32>
    %369 = vector.shape_cast %368 : vector<10xf32> to vector<10x1xf32>
    %cst_223 = arith.constant 3.200000e+01 : f32
    %370 = vector.broadcast %cst_223 : f32 to vector<10x1xf32>
    %371 = arith.divf %369, %370 : vector<10x1xf32>
    %372 = vector.broadcast %364 : vector<10x1xf32> to vector<10x32xf32>
    %373 = arith.subf %358, %372 : vector<10x32xf32>
    %cst_224 = arith.constant 9.99999974E-6 : f32
    %374 = vector.broadcast %cst_224 : f32 to vector<10x1xf32>
    %375 = arith.addf %371, %374 : vector<10x1xf32>
    %376 = math.rsqrt %375 : vector<10x1xf32>
    %377 = vector.broadcast %376 : vector<10x1xf32> to vector<10x32xf32>
    %378 = arith.mulf %373, %377 : vector<10x32xf32>
    %379 = vector.broadcast %359 : vector<1x32xf32> to vector<10x32xf32>
    %380 = arith.mulf %378, %379 : vector<10x32xf32>
    %381 = vector.broadcast %360 : vector<1x32xf32> to vector<10x32xf32>
    %382 = arith.addf %380, %381 : vector<10x32xf32>
    %383 = arith.truncf %382 : vector<10x32xf32> to vector<10x32xbf16>
    %c0_225 = arith.constant 0 : index
    %c0_226 = arith.constant 0 : index
    %384 = vector.load %arg25[%c0_225, %c0_226] : memref<32x128xbf16, #tpu.memory_space<vmem>>, vector<32x128xbf16>
    %cst_227 = arith.constant dense<0.000000e+00> : vector<10x128xf32>
    %385 = tpu.matmul %383, %384, %cst_227 {dimension_numbers = #tpu.dot_dimension_numbers<[1], [0], [0], [1], [0, 0, 1, 1], [], []>} : vector<10x32xbf16>, vector<32x128xbf16>, vector<10x128xf32> -> vector<10x128xf32>
    %386 = vector.shape_cast %385 : vector<10x128xf32> to vector<1x10x128xf32>
    %c0_228 = arith.constant 0 : index
    %c0_229 = arith.constant 0 : index
    %c0_230 = arith.constant 0 : index
    %387 = vector.load %arg26[%c0_228, %c0_229, %c0_230] : memref<1x10x128xf32, #tpu.memory_space<vmem>>, vector<1x10x128xf32>
    tpu.vector_store %arg26[%c0_228, %c0_229, %c0_230], %386 {strides = array<i32>} : memref<1x10x128xf32, #tpu.memory_space<vmem>>, vector<1x10x128xf32>,
    return
  }
  func.func @transform_0(%arg0: i32) -> (i32, i32, i32) {
    %c0_i32 = arith.constant 0 : i32
    %c0_i32_0 = arith.constant 0 : i32
    %c0_i32_1 = arith.constant 0 : i32
    return %arg0, %c0_i32, %c0_i32_0 : i32, i32, i32
  }
  func.func @transform_1(%arg0: i32) -> (i32, i32) {
    %c0_i32 = arith.constant 0 : i32
    %c0_i32_0 = arith.constant 0 : i32
    %c0_i32_1 = arith.constant 0 : i32
    return %c0_i32, %c0_i32_0 : i32, i32
  }
  func.func @transform_2(%arg0: i32) -> (i32, i32) {
    %c0_i32 = arith.constant 0 : i32
    %c0_i32_0 = arith.constant 0 : i32
    %c0_i32_1 = arith.constant 0 : i32
    return %c0_i32, %c0_i32_0 : i32, i32
  }
  func.func @transform_3(%arg0: i32) -> (i32, i32) {
    %c0_i32 = arith.constant 0 : i32
    %c0_i32_0 = arith.constant 0 : i32
    %c0_i32_1 = arith.constant 0 : i32
    return %c0_i32, %c0_i32_0 : i32, i32
  }
  func.func @transform_4(%arg0: i32) -> (i32, i32) {
    %c0_i32 = arith.constant 0 : i32
    %c0_i32_0 = arith.constant 0 : i32
    %c0_i32_1 = arith.constant 0 : i32
    return %c0_i32, %c0_i32_0 : i32, i32
  }
  func.func @transform_5(%arg0: i32) -> (i32, i32) {
    %c0_i32 = arith.constant 0 : i32
    %c0_i32_0 = arith.constant 0 : i32
    %c0_i32_1 = arith.constant 0 : i32
    return %c0_i32, %c0_i32_0 : i32, i32
  }
  func.func @transform_6(%arg0: i32) -> (i32, i32, i32) {
    %c0_i32 = arith.constant 0 : i32
    %c0_i32_0 = arith.constant 0 : i32
    %c0_i32_1 = arith.constant 0 : i32
    %c0_i32_2 = arith.constant 0 : i32
    return %c0_i32, %c0_i32_0, %c0_i32_1 : i32, i32, i32
  }
  func.func @transform_7(%arg0: i32) -> (i32, i32, i32) {
    %c0_i32 = arith.constant 0 : i32
    %c0_i32_0 = arith.constant 0 : i32
    %c0_i32_1 = arith.constant 0 : i32
    %c0_i32_2 = arith.constant 0 : i32
    return %c0_i32, %c0_i32_0, %c0_i32_1 : i32, i32, i32
  }
  func.func @transform_8(%arg0: i32) -> (i32, i32, i32) {
    %c0_i32 = arith.constant 0 : i32
    %c0_i32_0 = arith.constant 0 : i32
    %c0_i32_1 = arith.constant 0 : i32
    %c0_i32_2 = arith.constant 0 : i32
    return %c0_i32, %c0_i32_0, %c0_i32_1 : i32, i32, i32
  }
  func.func @transform_9(%arg0: i32) -> (i32, i32, i32) {
    %c0_i32 = arith.constant 0 : i32
    %c0_i32_0 = arith.constant 0 : i32
    %c0_i32_1 = arith.constant 0 : i32
    %c0_i32_2 = arith.constant 0 : i32
    return %c0_i32, %c0_i32_0, %c0_i32_1 : i32, i32, i32
  }
  func.func @transform_10(%arg0: i32) -> (i32, i32, i32) {
    %c0_i32 = arith.constant 0 : i32
    %c0_i32_0 = arith.constant 0 : i32
    %c0_i32_1 = arith.constant 0 : i32
    %c0_i32_2 = arith.constant 0 : i32
    return %c0_i32, %c0_i32_0, %c0_i32_1 : i32, i32, i32
  }
  func.func @transform_11(%arg0: i32) -> (i32, i32, i32) {
    %c0_i32 = arith.constant 0 : i32
    %c0_i32_0 = arith.constant 0 : i32
    %c0_i32_1 = arith.constant 0 : i32
    %c0_i32_2 = arith.constant 0 : i32
    return %c0_i32, %c0_i32_0, %c0_i32_1 : i32, i32, i32
  }
  func.func @transform_12(%arg0: i32) -> (i32, i32, i32) {
    %c0_i32 = arith.constant 0 : i32
    %c0_i32_0 = arith.constant 0 : i32
    %c0_i32_1 = arith.constant 0 : i32
    %c0_i32_2 = arith.constant 0 : i32
    return %c0_i32, %c0_i32_0, %c0_i32_1 : i32, i32, i32
  }
  func.func @transform_13(%arg0: i32) -> (i32, i32, i32) {
    %c0_i32 = arith.constant 0 : i32
    %c0_i32_0 = arith.constant 0 : i32
    %c0_i32_1 = arith.constant 0 : i32
    %c0_i32_2 = arith.constant 0 : i32
    return %c0_i32, %c0_i32_0, %c0_i32_1 : i32, i32, i32
  }
  func.func @transform_14(%arg0: i32) -> (i32, i32, i32) {
    %c0_i32 = arith.constant 0 : i32
    %c0_i32_0 = arith.constant 0 : i32
    %c0_i32_1 = arith.constant 0 : i32
    %c0_i32_2 = arith.constant 0 : i32
    return %c0_i32, %c0_i32_0, %c0_i32_1 : i32, i32, i32
  }
  func.func @transform_15(%arg0: i32) -> (i32, i32, i32) {
    %c0_i32 = arith.constant 0 : i32
    %c0_i32_0 = arith.constant 0 : i32
    %c0_i32_1 = arith.constant 0 : i32
    %c0_i32_2 = arith.constant 0 : i32
    return %c0_i32, %c0_i32_0, %c0_i32_1 : i32, i32, i32
  }
  func.func @transform_16(%arg0: i32) -> (i32, i32, i32) {
    %c0_i32 = arith.constant 0 : i32
    %c0_i32_0 = arith.constant 0 : i32
    %c0_i32_1 = arith.constant 0 : i32
    %c0_i32_2 = arith.constant 0 : i32
    return %c0_i32, %c0_i32_0, %c0_i32_1 : i32, i32, i32
  }
  func.func @transform_17(%arg0: i32) -> (i32, i32, i32) {
    %c0_i32 = arith.constant 0 : i32
    %c0_i32_0 = arith.constant 0 : i32
    %c0_i32_1 = arith.constant 0 : i32
    %c0_i32_2 = arith.constant 0 : i32
    return %c0_i32, %c0_i32_0, %c0_i32_1 : i32, i32, i32
  }
  func.func @transform_18(%arg0: i32) -> (i32, i32, i32) {
    %c0_i32 = arith.constant 0 : i32
    %c0_i32_0 = arith.constant 0 : i32
    %c0_i32_1 = arith.constant 0 : i32
    %c0_i32_2 = arith.constant 0 : i32
    return %c0_i32, %c0_i32_0, %c0_i32_1 : i32, i32, i32
  }
  func.func @transform_19(%arg0: i32) -> (i32, i32, i32) {
    %c0_i32 = arith.constant 0 : i32
    %c0_i32_0 = arith.constant 0 : i32
    %c0_i32_1 = arith.constant 0 : i32
    %c0_i32_2 = arith.constant 0 : i32
    return %c0_i32, %c0_i32_0, %c0_i32_1 : i32, i32, i32
  }
  func.func @transform_20(%arg0: i32) -> (i32, i32, i32) {
    %c0_i32 = arith.constant 0 : i32
    %c0_i32_0 = arith.constant 0 : i32
    %c0_i32_1 = arith.constant 0 : i32
    %c0_i32_2 = arith.constant 0 : i32
    return %c0_i32, %c0_i32_0, %c0_i32_1 : i32, i32, i32
  }
  func.func @transform_21(%arg0: i32) -> (i32, i32, i32) {
    %c0_i32 = arith.constant 0 : i32
    %c0_i32_0 = arith.constant 0 : i32
    %c0_i32_1 = arith.constant 0 : i32
    %c0_i32_2 = arith.constant 0 : i32
    return %c0_i32, %c0_i32_0, %c0_i32_1 : i32, i32, i32
  }
  func.func @transform_22(%arg0: i32) -> (i32, i32) {
    %c0_i32 = arith.constant 0 : i32
    %c0_i32_0 = arith.constant 0 : i32
    %c0_i32_1 = arith.constant 0 : i32
    return %c0_i32, %c0_i32_0 : i32, i32
  }
  func.func @transform_23(%arg0: i32) -> (i32, i32) {
    %c0_i32 = arith.constant 0 : i32
    %c0_i32_0 = arith.constant 0 : i32
    %c0_i32_1 = arith.constant 0 : i32
    return %c0_i32, %c0_i32_0 : i32, i32
  }
  func.func @transform_24(%arg0: i32) -> (i32, i32) {
    %c0_i32 = arith.constant 0 : i32
    %c0_i32_0 = arith.constant 0 : i32
    %c0_i32_1 = arith.constant 0 : i32
    return %c0_i32, %c0_i32_0 : i32, i32
  }
  func.func @transform_25(%arg0: i32) -> (i32, i32, i32) {
    %c0_i32 = arith.constant 0 : i32
    %c0_i32_0 = arith.constant 0 : i32
    %c0_i32_1 = arith.constant 0 : i32
    return %arg0, %c0_i32, %c0_i32_0 : i32, i32, i32
  }
}

</mosaic_0001>

<bundles_post_ra>
// kernel: eq.8
= control target key start
LH: loop header
LB: loop body
LE: loop exit
PB: predicated region body
PF: predicated region fallthrough
CT: control target
= control target key end

     0   :  { %vm7_vm0 = vcmask 39936   ;;  %vm13_vm1 = vcmask 80936   ;;  %s39_s0 = inlined_call_operand.vmem [shape: s32[2,5], index: 0, kind: input, shape index: {}]   ;;  %s40_s1 = inlined_call_operand.vmem [shape: s32[10], index: 1, kind: output, shape index: {}]  }
   0x1   :  { %v4_v0 = vld [vmem:[%s39_s0] sm:$0x3]  ;;  %s22_s0 = smov 5  }
   0x2   :  { %5 = vst [vmem:[#allocation1] sm:$0x3] %v4_v0 }
   0x9   :  { %v10_v1 = vld [vmem:[#allocation1 + $0x1] sm:$0x1]   ;;  %v6_v2 = vld [vmem:[#allocation1] sm:$0x1]  }
   0xa   :  { %11 = vrot.lane.b32.xlu0 %v10_v1, %s22_s0  ;;  %8 = vst.msk [vmem:[#allocation0] sm:$0x1] %vm7_vm0, %v6_v2  }
  0x7c   :  { %v12_v3 = vpop.permute.xlu0 %11  }
  0x7d   :  { %14 = vst.msk [vmem:[#allocation0] sm:$0x1] %vm13_vm1, %v12_v3  }
  0x84   :  { %v18_v4 = vld [vmem:[#allocation0] sm:$0x1] }
  0x85   :  { %20 = vst [vmem:[%s40_s1] sm:$0x1] %v18_v4 }

// kernel: tile.9
= control target key start
LH: loop header
LB: loop body
LE: loop exit
PB: predicated region body
PF: predicated region fallthrough
CT: control target
= control target key end

     0   :  { %vm3_vm0 = vcmask 261120   ;;  %s34_s0 = inlined_call_operand.vmem [shape: f32[2,5,32], index: 0, kind: input, shape index: {}]   ;;  %s35_s1 = inlined_call_operand.vmem [shape: f32[10,32], index: 1, kind: output, shape index: {}]  }
   0x1   :  { %v2_v0 = vld [vmem:[%s34_s0] sm:$0x1f]   ;;  %v10_v1 = vld [vmem:[%s34_s0 + $0x8] sm:$0x1f]  }
   0x2   :  { %4 = vst.msk [vmem:[%s35_s1] sm:$0x1f] %vm3_vm0, %v2_v0   ;;  %11 = vst.msk [vmem:[%s35_s1 + $0x5] sm:$0x1f] %vm3_vm0, %v10_v1  }

// kernel: frozen_image_embedder_forward.1
= control target key start
LH: loop header
LB: loop body
LE: loop exit
PB: predicated region body
PF: predicated region fallthrough
CT: control target
= control target key end

     0   :  { %vm628_vm0 = vcmask 261120   ;;  %vm632_vm1 = vcmask 254976   ;;  %vm3988_vm2 = vmmov 0   ;;  %vm917_vm3 = vcmask 130048   ;;  %s4797_s1 = inlined_call_operand.vmem [shape: bf16[768,32], index: 1, kind: input, shape index: {}]   ;;  %s4798_s0 = inlined_call_operand.vmem [shape: bf16[1,10,768], index: 0, kind: input, shape index: {}]   ;;  %s4799_s2 = inlined_call_operand.vmem [shape: f32[10,32], index: 2, kind: input, shape index: {}]   ;;  %s4800_s4 = inlined_call_operand.vmem [shape: f32[1,32], index: 4, kind: input, shape index: {}]   ;;  %s4801_s5 = inlined_call_operand.vmem [shape: f32[1,32], index: 5, kind: input, shape index: {}]   ;;  %s4802_s8 = inlined_call_operand.vmem [shape: bf16[4,32,16], index: 8, kind: input, shape index: {}]   ;;  %s4803_s10 = inlined_call_operand.vmem [shape: bf16[4,32,16], index: 10, kind: input, shape index: {}]   ;;  %s4804_s12 = inlined_call_operand.vmem [shape: bf16[4,32,16], index: 12, kind: input, shape index: {}]   ;;  %s4805_s6 = inlined_call_operand.vmem [shape: f32[2,1,32], index: 6, kind: input, shape index: {}]   ;;  %s4806_s7 = inlined_call_operand.vmem [shape: f32[2,1,32], index: 7, kind: input, shape index: {}]   ;;  %s4807_s9 = inlined_call_operand.vmem [shape: f32[4,1,16], index: 9, kind: input, shape index: {}]   ;;  %s4808_s11 = inlined_call_operand.vmem [shape: f32[4,1,16], index: 11, kind: input, shape index: {}]   ;;  %s4809_s13 = inlined_call_operand.vmem [shape: f32[4,1,16], index: 13, kind: input, shape index: {}]   ;;  %s4810_s3 = inlined_call_operand.vmem [shape: f32[10,10], index: 3, kind: input, shape index: {}]   ;;  %s4811_s14 = inlined_call_operand.vmem [shape: bf16[4,16,32], index: 14, kind: input, shape index: {}]   ;;  %s4812_s15 = inlined_call_operand.vmem [shape: f32[2,1,32], index: 15, kind: input, shape index: {}]   ;;  %s4813_s18 = inlined_call_operand.vmem [shape: bf16[2,32,64], index: 18, kind: input, shape index: {}]   ;;  %s4814_s16 = inlined_call_operand.vmem [shape: f32[2,1,32], index: 16, kind: input, shape index: {}]   ;;  %s4815_s17 = inlined_call_operand.vmem [shape: f32[2,1,32], index: 17, kind: input, shape index: {}]   ;;  %s4816_s20 = inlined_call_operand.vmem [shape: bf16[2,64,32], index: 20, kind: input, shape index: {}]   ;;  %s4817_s19 = inlined_call_operand.vmem [shape: f32[2,1,64], index: 19, kind: input, shape index: {}]   ;;  %s4818_s21 = inlined_call_operand.vmem [shape: f32[2,1,32], index: 21, kind: input, shape index: {}]   ;;  %s4819_s24 = inlined_call_operand.vmem [shape: bf16[32,128], index: 24, kind: input, shape index: {}]   ;;  %s4820_s22 = inlined_call_operand.vmem [shape: f32[1,32], index: 22, kind: input, shape index: {}]   ;;  %s4821_s23 = inlined_call_operand.vmem [shape: f32[1,32], index: 23, kind: input, shape index: {}]   ;;  %s4822_s25 = inlined_call_operand.vmem [shape: f32[1,10,128], index: 25, kind: output, shape index: {}]  }
   0x1   :  { %4831 = sst [smem:[#allocation2_spill]] %s4797_s1  ;;  %vm1035_vm4 = vcmask 1041408   ;;  %vm4400_vm5 = vmpackc.low %vm917_vm3, %vm917_vm3  ;;  %vm3989_vm6 = vmmov 1   ;;  %vm1009_vm8 = vcmask 74752   ;;  %vm1005_vm9 = vcmask 80896  }
   0x2   :  { %4832 = sst [smem:[#allocation3_spill]] %s4798_s0  ;;  %vm4404_vm7 = vmpackc.low %vm1035_vm4, %vm3989_vm6  ;;  %vm1786_vm10 = vcmask 523264  }
   0x3   :  { %4833 = sst [smem:[#allocation4_spill]] %s4799_s2  ;;  %s4842_s27 = sld [smem:[#allocation3_spill]] }
   0x4   :  { %4834 = sst [smem:[#allocation5_spill]] %s4800_s4  ;;  %s4843_s30 = sld [smem:[#allocation4_spill]] }
   0x5   :  { %4835 = sst [smem:[#allocation6_spill]] %s4801_s5  ;;  %s4844_s26 = sld [smem:[#allocation5_spill]] }
   0x6   :  { %4836 = sst [smem:[#allocation7_spill]] %s4802_s8  ;;  %s4845_s5 = sld [smem:[#allocation6_spill]] }
   0x7   :  { %4837 = sst [smem:[#allocation8_spill]] %s4803_s10  ;;  %s4841_s10 = sld [smem:[#allocation2_spill]] }
   0x8   :  { %4838 = sst [smem:[#allocation9_spill]] %s4804_s12  ;;  %s4846_s8 = sld [smem:[#allocation7_spill]] }
   0x9   :  { %4839 = sst [smem:[#allocation10_spill]] %s4805_s6  ;;  %v3847_v31 = vld [vmem:[%s4842_s27] ss:$24 sps:$4 sm:$0x1f]   ;;  %s4849_s1 = sld [smem:[#allocation8_spill]] }
   0xa   :  { %4840 = sst [smem:[#allocation11_spill]] %s4806_s7  ;;  %v3849_v32 = vld [vmem:[%s4842_s27 + $0x4] ss:$24 sps:$4 sm:$0x1f]   ;;  %v184_v60 = vld [vmem:[%s4843_s30 + $0x8] sm:$0x3] }
   0xb   :  { %535 = vmatprep.mubr.bf16.mxu0 %v3849_v32  ;;  %v3852_v35 = vld [vmem:[%s4842_s27 + $0x8] ss:$24 sps:$4 sm:$0x1f]   ;;  %v3854_v36 = vld [vmem:[%s4842_s27 + $0xc] ss:$24 sps:$4 sm:$0x1f]  }
   0xc   :  { %576 = vmatprep.mubr.bf16.mxu1 %v3854_v36  ;;  %v3872_v47 = vld [vmem:[%s4842_s27 + $0x14] ss:$24 sps:$4 sm:$0x1f]   ;;  %v3870_v53 = vld [vmem:[%s4842_s27 + $0x10] ss:$24 sps:$4 sm:$0x1f]  }
   0xd   :  { %v3816_v0 = vld [vmem:[%s4841_s10 + $0x40] sm:$0xff]   ;;  %v3820_v4 = vld [vmem:[%s4841_s10 + $0x48] sm:$0xff]   ;;  %v3824_v8 = vld [vmem:[%s4841_s10 + $0x50] sm:$0xff]  }
   0xe   :  { %v3817_v1 = vld [vmem:[%s4841_s10] sm:$0xff]   ;;  %3380 = vmatprep.subr.bf16.mxu0 %v3816_v0  ;;  %v3821_v5 = vld [vmem:[%s4841_s10 + $0x8] sm:$0xff]   ;;  %v3825_v9 = vld [vmem:[%s4841_s10 + $0x10] sm:$0xff]  }
   0xf   :  { %v3818_v2 = vld [vmem:[%s4841_s10 + $0xc0] sm:$0xff]   ;;  %3381 = vmatpush3.bf16.msra.mxu0 %v3817_v1  ;;  %v3822_v6 = vld [vmem:[%s4841_s10 + $0xc8] sm:$0xff]   ;;  %v3826_v10 = vld [vmem:[%s4841_s10 + $0xd0] sm:$0xff]  }
  0x10   :  { %v3819_v3 = vld [vmem:[%s4841_s10 + $0x80] sm:$0xff]   ;;  %3402 = vmatprep.subr.bf16.mxu1 %v3818_v2  ;;  %3382 = vmatprep.subr.bf16.mxu0 %v3820_v4  ;;  %v3823_v7 = vld [vmem:[%s4841_s10 + $0x88] sm:$0xff]   ;;  %v3827_v11 = vld [vmem:[%s4841_s10 + $0x90] sm:$0xff]  }
  0x11   :  { %3403 = vmatpush3.bf16.msra.mxu1 %v3819_v3  ;;  %v3828_v12 = vld [vmem:[%s4841_s10 + $0x58] sm:$0xff]   ;;  %v3832_v16 = vld [vmem:[%s4841_s10 + $0x60] sm:$0xff]   ;;  %v3836_v20 = vld [vmem:[%s4841_s10 + $0x68] sm:$0xff]  }
  0x12   :  { %3404 = vmatprep.subr.bf16.mxu1 %v3822_v6  ;;  %v3829_v13 = vld [vmem:[%s4841_s10 + $0x18] sm:$0xff]   ;;  %v3833_v17 = vld [vmem:[%s4841_s10 + $0x20] sm:$0xff]   ;;  %v3837_v21 = vld [vmem:[%s4841_s10 + $0x28] sm:$0xff]  }
  0x13   :  { %3383 = vmatpush3.bf16.msra.mxu0 %v3821_v5  ;;  %v3830_v14 = vld [vmem:[%s4841_s10 + $0xd8] sm:$0xff]   ;;  %v3834_v18 = vld [vmem:[%s4841_s10 + $0xe0] sm:$0xff]   ;;  %v3838_v22 = vld [vmem:[%s4841_s10 + $0xe8] sm:$0xff]  }
  0x14   :  { %3384 = vmatprep.subr.bf16.mxu0 %v3824_v8  ;;  %v3831_v15 = vld [vmem:[%s4841_s10 + $0x98] sm:$0xff]   ;;  %v3835_v19 = vld [vmem:[%s4841_s10 + $0xa0] sm:$0xff]   ;;  %v3839_v23 = vld [vmem:[%s4841_s10 + $0xa8] sm:$0xff]  }
  0x15   :  { %3405 = vmatpush3.bf16.msra.mxu1 %v3823_v7  ;;  %v3840_v24 = vld [vmem:[%s4841_s10 + $0x70] sm:$0xff]   ;;  %v3844_v28 = vld [vmem:[%s4841_s10 + $0x78] sm:$0xff]   ;;  %v3851_v34 = vld [vmem:[%s4841_s10 + $0x140] sm:$0xff]  }
  0x16   :  { %3406 = vmatprep.subr.bf16.mxu1 %v3826_v10  ;;  %v3841_v25 = vld [vmem:[%s4841_s10 + $0x30] sm:$0xff]   ;;  %v3845_v29 = vld [vmem:[%s4841_s10 + $0x38] sm:$0xff]   ;;  %v3855_v37 = vld [vmem:[%s4841_s10 + $0x100] sm:$0xff]  }
  0x17   :  { %3385 = vmatpush3.bf16.msra.mxu0 %v3825_v9  ;;  %v3842_v26 = vld [vmem:[%s4841_s10 + $0xf0] sm:$0xff]   ;;  %v3846_v30 = vld [vmem:[%s4841_s10 + $0xf8] sm:$0xff]   ;;  %v3856_v38 = vld [vmem:[%s4841_s10 + $0x148] sm:$0xff]  }
  0x18   :  { %3386 = vmatprep.subr.bf16.mxu0 %v3828_v12  ;;  %v3843_v27 = vld [vmem:[%s4841_s10 + $0xb0] sm:$0xff]   ;;  %v3850_v33 = vld [vmem:[%s4841_s10 + $0xb8] sm:$0xff]   ;;  %v3857_v39 = vld [vmem:[%s4841_s10 + $0x108] sm:$0xff]  }
  0x19   :  { %3407 = vmatpush3.bf16.msra.mxu1 %v3827_v11  ;;  %v3858_v40 = vld [vmem:[%s4841_s10 + $0x150] sm:$0xff]   ;;  %v3860_v42 = vld [vmem:[%s4841_s10 + $0x158] sm:$0xff]   ;;  %v3862_v44 = vld [vmem:[%s4841_s10 + $0x160] sm:$0xff]  }
  0x1a   :  { %3408 = vmatprep.subr.bf16.mxu1 %v3830_v14  ;;  %v3859_v41 = vld [vmem:[%s4841_s10 + $0x110] sm:$0xff]   ;;  %v3861_v43 = vld [vmem:[%s4841_s10 + $0x118] sm:$0xff]   ;;  %v3863_v45 = vld [vmem:[%s4841_s10 + $0x120] sm:$0xff]  }
  0x1b   :  { %3387 = vmatpush3.bf16.msra.mxu0 %v3829_v13  ;;  %v3864_v46 = vld [vmem:[%s4841_s10 + $0x168] sm:$0xff]   ;;  %v3866_v49 = vld [vmem:[%s4841_s10 + $0x170] sm:$0xff]   ;;  %v3868_v51 = vld [vmem:[%s4841_s10 + $0x178] sm:$0xff]  }
  0x1c   :  { %3388 = vmatprep.subr.bf16.mxu0 %v3832_v16  ;;  %v3865_v48 = vld [vmem:[%s4841_s10 + $0x128] sm:$0xff]   ;;  %v3867_v50 = vld [vmem:[%s4841_s10 + $0x130] sm:$0xff]   ;;  %v3869_v52 = vld [vmem:[%s4841_s10 + $0x138] sm:$0xff]  }
  0x1d   :  { %3409 = vmatpush3.bf16.msra.mxu1 %v3831_v15  ;;  %v183_v55 = vld [vmem:[%s4843_s30] sm:$0xff]  ;;  %s4850_s30 = sld [smem:[#allocation9_spill]] }
  0x1e   :  { %3410 = vmatprep.subr.bf16.mxu1 %v3834_v18 }
  0x1f   :  { %3389 = vmatpush3.bf16.msra.mxu0 %v3833_v17 }
  0x20   :  { %3390 = vmatprep.subr.bf16.mxu0 %v3836_v20 }
  0x21   :  { %3411 = vmatpush3.bf16.msra.mxu1 %v3835_v19 }
  0x22   :  { %3412 = vmatprep.subr.bf16.mxu1 %v3838_v22 }
  0x23   :  { %3391 = vmatpush3.bf16.msra.mxu0 %v3837_v21 }
  0x24   :  { %3392 = vmatprep.subr.bf16.mxu0 %v3840_v24 }
  0x25   :  { %3413 = vmatpush3.bf16.msra.mxu1 %v3839_v23 }
  0x26   :  { %3414 = vmatprep.subr.bf16.mxu1 %v3842_v26 }
  0x27   :  { %3393 = vmatpush3.bf16.msra.mxu0 %v3841_v25 }
  0x28   :  { %3394 = vmatprep.subr.bf16.mxu0 %v3844_v28 }
  0x29   :  { %3415 = vmatpush3.bf16.msra.mxu1 %v3843_v27 }
  0x2a   :  { %3416 = vmatprep.subr.bf16.mxu1 %v3846_v30 }
  0x2b   :  { %3395 = vmatpush3.bf16.msra.mxu0 %v3845_v29 }
  0x2c   :  { %3424 = vmatprep.subr.bf16.mxu0 %v3851_v34 }
  0x2d   :  { %3417 = vmatpush3.bf16.msra.mxu1 %v3850_v33 }
  0x2e   :  { %536 = vmatmul.mubr.bf16.vlgmr.msra.gmra.mrb[0].mxu0 %v3847_v31 }
  0x2f   :  { %3425 = vmatpush3.bf16.msra.mxu0 %v3855_v37  ;;  %617 = vmatprep.mubr.bf16.mxu0 %v3872_v47  ;;  %v3186_v37 = vld [vmem:[%s4845_s5] ss:$0 sm:$0xff]  ;;  %s4848_s5 = sld [smem:[#allocation11_spill]] }
  0x30   :  { %577 = vmatmul.mubr.bf16.vlgmr.msra.gmra.mrb[0].mxu1 %v3852_v35  ;;  %3426 = vmatprep.subr.bf16.mxu0 %v3856_v38  ;;  %v3185_v35 = vld [vmem:[%s4844_s26] ss:$0 sm:$0xff]  ;;  %s4847_s26 = sld [smem:[#allocation10_spill]] }
  0x33   :  { %3427 = vmatpush3.bf16.msra.mxu0 %v3857_v39 }
  0x34   :  { %3428 = vmatprep.subr.bf16.mxu0 %v3858_v40 }
  0x37   :  { %3429 = vmatpush3.bf16.msra.mxu0 %v3859_v41 }
  0x38   :  { %3430 = vmatprep.subr.bf16.mxu0 %v3860_v42 }
  0x3b   :  { %3431 = vmatpush3.bf16.msra.mxu0 %v3861_v43 }
  0x3c   :  { %3432 = vmatprep.subr.bf16.mxu0 %v3862_v44 }
  0x3f   :  { %3433 = vmatpush3.bf16.msra.mxu0 %v3863_v45 }
  0x40   :  { %3434 = vmatprep.subr.bf16.mxu0 %v3864_v46 }
  0x43   :  { %3435 = vmatpush3.bf16.msra.mxu0 %v3865_v48 }
  0x44   :  { %3436 = vmatprep.subr.bf16.mxu0 %v3866_v49 }
  0x47   :  { %3437 = vmatpush3.bf16.msra.mxu0 %v3867_v50 }
  0x48   :  { %3438 = vmatprep.subr.bf16.mxu0 %v3868_v51 }
  0x4b   :  { %3439 = vmatpush3.bf16.msra.mxu0 %v3869_v52 }
  0x4e   :  { %618 = vmatmul.mubr.bf16.vlgmr.msra.gmra.mrb[4].mxu0 %v3870_v53 }
 0x101   :  { %v3396_v54 = vpop.f32.mrb[0].mxu0 }
 0x102   :  { %v3397_v56 = vpop.f32.mrb[1].mxu0 }
 0x103   :  { %v3398_v57 = vadd.f32 %v3397_v56, %v3396_v54  ;;  %v3399_v58 = vpop.f32.mrb[2].mxu0  ;;  %v3418_v59 = vpop.f32.mrb[0].mxu1  ;;  %v3873_v56 = vld [vmem:[%s4846_s8] sm:$0xff]  }
 0x104   :  { %v3400_v61 = vpop.f32.mrb[3].mxu0  ;;  %v3419_v0 = vpop.f32.mrb[1].mxu1 }
 0x105   :  { %v538_v62 = vadd.f32 %v3398_v57, %v183_v55  ;;  %v3401_v63 = vadd.f32 %v3400_v61, %v3399_v58  ;;  %v3420_v1 = vadd.f32 %v3419_v0, %v3418_v59  ;;  %v3421_v2 = vpop.f32.mrb[2].mxu1  ;;  %v3987_v57 = vmov 0.0   ;;  %v3874_v58 = vld [vmem:[%s4846_s8 + $0x10] sm:$0xff]   ;;  %v3875_v59 = vld [vmem:[%s4846_s8 + $0x8] sm:$0xff]  }
 0x106   :  { %v3422_v4 = vpop.f32.mrb[3].mxu1  ;;  %3541 = vmatprep.subr.bf16.mxu1 %v3987_v57  ;;  %3579 = vmatprep.subr.bf16.mxu0 %v3987_v57 }
 0x107   :  { %v541_v3 = vadd.f32 %v3401_v63, %v184_v60  ;;  %v579_v5 = vadd.f32 %v3420_v1, %v538_v62  ;;  %v3423_v6 = vadd.f32 %v3422_v4, %v3421_v2  ;;  %3542 = vmatpush3.bf16.msra.mxu1 %v3873_v56  ;;  %3580 = vmatpush3.bf16.msra.mxu0 %v3874_v58  ;;  %v3876_v60 = vld [vmem:[%s4846_s8 + $0x18] sm:$0xff]  }
 0x108   :  { %3543 = vmatprep.subr.bf16.mxu1 %v3987_v57  ;;  %3581 = vmatprep.subr.bf16.mxu0 %v3987_v57 }
 0x109   :  { %v582_v7 = vadd.f32 %v3423_v6, %v541_v3  ;;  %3545 = vmatprep.mubr.msk.bf16.mxu1 %vm3988_vm2, %v3987_v57  ;;  %3583 = vmatprep.mubr.msk.bf16.mxu0 %vm3988_vm2, %v3987_v57 }
 0x10b   :  { %3544 = vmatpush3.bf16.msra.mxu1 %v3875_v59  ;;  %3582 = vmatpush3.bf16.msra.mxu0 %v3876_v60 }
 0x10c   :  { %3549 = vmatprep.subr.bf16.mxu1 %v3987_v57  ;;  %3595 = vmatprep.subr.bf16.mxu0 %v3987_v57 }
 0x121   :  { %v3440_v8 = vpop.f32.mrb[4].mxu0 }
 0x122   :  { %v3441_v9 = vpop.f32.mrb[5].mxu0 }
 0x123   :  { %v3442_v10 = vadd.f32 %v3441_v9, %v3440_v8  ;;  %v3443_v11 = vpop.f32.mrb[6].mxu0  ;;  %v3188_v9 = vld [vmem:[%s4848_s5] ss:$0 sm:$0xff] }
 0x124   :  { %v3444_v12 = vpop.f32.mrb[7].mxu0 }
 0x125   :  { %v3445_v13 = vadd.f32 %v3444_v12, %v3443_v11  ;;  %v620_v14 = vadd.f32 %v3442_v10, %v579_v5  ;;  %v3187_v5 = vld [vmem:[%s4847_s26] ss:$0 sm:$0xff] }
 0x127   :  { %v629_v15 = vsel %vm628_vm0, %v620_v14, 0.0  ;;  %v623_v16 = vadd.f32 %v3445_v13, %v582_v7  ;;  %v3877_v13 = vld [vmem:[%s4849_s1] sm:$0xff]  }
 0x128   :  { %630 = vadd.xlane.f32.xlu0 %v629_v15 }
 0x129   :  { %v633_v17 = vsel %vm632_vm1, %v623_v16, 0.0 }
 0x12c   :  { %634 = vadd.xlane.f32.xlu0 %v633_v17  ;;  %v3880_v17 = vld [vmem:[%s4850_s30 + $0x18] sm:$0xff]  }
 0x1b5   :  { %v631_v18 = vpop.xlane.xlu0 %630 }
 0x1b6   :  { %v637_v19 = vmul.f32 0.03125, %v631_v18  ;;  %v3881_v18 = vld [vmem:[%s4850_s30] sm:$0xff]  }
 0x1b8   :  { %v639_v20 = vsub.f32 %v620_v14, %v637_v19  ;;  %v3878_v14 = vld [vmem:[%s4850_s30 + $0x10] sm:$0xff]   ;;  %v3882_v19 = vld [vmem:[%s4850_s30 + $0x8] sm:$0xff]  }
 0x1b9   :  { %v635_v21 = vpop.xlane.xlu0 %634 }
 0x1ba   :  { %v638_v22 = vmul.f32 0.03125, %v635_v21  ;;  %v641_v23 = vmul.f32 %v639_v20, %v639_v20 }
 0x1bc   :  { %v640_v24 = vsub.f32 %v623_v16, %v638_v22  ;;  %v643_v25 = vsel %vm628_vm0, %v641_v23, 0.0  ;;  %v3879_v16 = vld [vmem:[%s4849_s1 + $0x8] sm:$0xff]  }
 0x1bd   :  { %644 = vadd.xlane.f32.xlu1 %v643_v25 }
 0x1be   :  { %v642_v26 = vmul.f32 %v640_v24, %v640_v24 }
 0x1c0   :  { %v646_v27 = vsel %vm632_vm1, %v642_v26, 0.0  ;;  %v4386_v26 = vld [vmem:[%s4807_s9 + $0x1] ss:$0 sm:$0xff] }
 0x1c1   :  { %647 = vadd.xlane.f32.xlu1 %v646_v27 }
 0x24a   :  { %v645_v28 = vpop.xlane.xlu1 %644 }
 0x24b   :  { %v649_v29 = vmul.f32 0.03125, %v645_v28 }
 0x24d   :  { %v651_v30 = vadd.f32 1e-05, %v649_v29 }
 0x24e   :  { %v648_v31 = vpop.xlane.xlu1 %647 }
 0x24f   :  { %3915 = vrsqrt.f32 %v651_v30  ;;  %v650_v32 = vmul.f32 0.03125, %v648_v31 }
 0x251   :  { %v652_v33 = vadd.f32 1e-05, %v650_v32 }
 0x253   :  { %3917 = vrsqrt.f32 %v652_v33  ;;  %v3193_v33 = vld [vmem:[%s4808_s11] ss:$0 sm:$0xff] }
 0x259   :  { %v3916_v34 = vpop.eup %3915 }
 0x25a   :  { %v655_v36 = vmul.f32 %v3916_v34, %v639_v20  ;;  %v3189_v20 = vld [vmem:[%s4807_s9] ss:$0 sm:$0xff] }
 0x25c   :  { %v663_v38 = vmul.f32 %v3185_v35, %v655_v36 }
 0x25d   :  { %v3918_v39 = vpop.eup %3917 }
 0x25e   :  { %v4298_v40 = vadd.f32 %v3186_v37, %v663_v38  ;;  %v656_v41 = vmul.f32 %v3918_v39, %v640_v24 }
 0x260   :  { %v677_v42 = vsel %vm628_vm0, %v4298_v40, 0.0  ;;  %v664_v43 = vmul.f32 %v3185_v35, %v656_v41  ;;  %v3231_v35 = vld [vmem:[%s4809_s13 + $0x1] ss:$0 sm:$0xff] }
 0x261   :  { %678 = vadd.xlane.f32.xlu0 %v677_v42 }
 0x262   :  { %v4302_v44 = vadd.f32 %v3186_v37, %v664_v43 }
 0x264   :  { %v680_v45 = vsel %vm632_vm1, %v4302_v44, 0.0 }
 0x265   :  { %681 = vadd.xlane.f32.xlu1 %v680_v45 }
 0x2ee   :  { %v679_v46 = vpop.xlane.xlu0 %678 }
 0x2ef   :  { %v683_v47 = vmul.f32 0.03125, %v679_v46 }
 0x2f1   :  { %v685_v48 = vsub.f32 %v4298_v40, %v683_v47 }
 0x2f2   :  { %v682_v49 = vpop.xlane.xlu1 %681 }
 0x2f3   :  { %v684_v50 = vmul.f32 0.03125, %v682_v49  ;;  %v687_v51 = vmul.f32 %v685_v48, %v685_v48 }
 0x2f5   :  { %v686_v52 = vsub.f32 %v4302_v44, %v684_v50  ;;  %v689_v53 = vsel %vm628_vm0, %v687_v51, 0.0 }
 0x2f6   :  { %690 = vadd.xlane.f32.xlu0 %v689_v53  ;;  %v3197_v53 = vld [vmem:[%s4809_s13] ss:$0 sm:$0xff] }
 0x2f7   :  { %v688_v54 = vmul.f32 %v686_v52, %v686_v52 }
 0x2f9   :  { %v692_v55 = vsel %vm632_vm1, %v688_v54, 0.0 }
 0x2fa   :  { %693 = vadd.xlane.f32.xlu1 %v692_v55 }
 0x383   :  { %v691_v61 = vpop.xlane.xlu0 %690 }
 0x384   :  { %v695_v62 = vmul.f32 0.03125, %v691_v61 }
 0x386   :  { %v697_v63 = vadd.f32 1e-05, %v695_v62 }
 0x387   :  { %v694_v0 = vpop.xlane.xlu1 %693 }
 0x388   :  { %3919 = vrsqrt.f32 %v697_v63  ;;  %v696_v1 = vmul.f32 0.03125, %v694_v0  ;;  %v4429_v0 = vld [vmem:[%s4810_s3 + $0x8] sm:$0x3] }
 0x38a   :  { %v698_v2 = vadd.f32 1e-05, %v696_v1  ;;  %v4434_v1 = vld [vmem:[%s4810_s3] sm:$0xff] }
 0x38c   :  { %3921 = vrsqrt.f32 %v698_v2 }
 0x392   :  { %v3920_v3 = vpop.eup %3919 }
 0x393   :  { %v701_v4 = vmul.f32 %v3920_v3, %v685_v48 }
 0x395   :  { %v709_v7 = vmul.f32 %v3187_v5, %v701_v4 }
 0x396   :  { %v3922_v6 = vpop.eup %3921 }
 0x397   :  { %v702_v8 = vmul.f32 %v3922_v6, %v686_v52  ;;  %v717_v11 = vadd.f32 %v3188_v9, %v709_v7 }
 0x399   :  { %v710_v10 = vmul.f32 %v3187_v5, %v702_v8 }
 0x39b   :  { %v718_v12 = vadd.f32 %v3188_v9, %v710_v10 }
 0x39d   :  { %v4344_v15 = vpack.c.bf16 %v718_v12, %v717_v11 }
 0x39f   :  { %3546 = vmatmul.mubr.msk.bf16.vlgmr.msra.gmra.mrb[4].mxu1 %vm628_vm0, %v4344_v15  ;;  %3584 = vmatmul.mubr.msk.bf16.vlgmr.msra.gmra.mrb[8].mxu0 %vm628_vm0, %v4344_v15 }
 0x3a0   :  { %3550 = vmatpush3.bf16.msra.mxu1 %v3877_v13  ;;  %3596 = vmatpush3.bf16.msra.mxu0 %v3878_v14 }
 0x3a1   :  { %3551 = vmatprep.subr.bf16.mxu1 %v3987_v57  ;;  %3597 = vmatprep.subr.bf16.mxu0 %v3987_v57 }
 0x3a2   :  { %3553 = vmatprep.mubr.msk.bf16.mxu1 %vm3988_vm2, %v3987_v57  ;;  %3599 = vmatprep.mubr.msk.bf16.mxu0 %vm3988_vm2, %v3987_v57 }
 0x3a4   :  { %3552 = vmatpush3.bf16.msra.mxu1 %v3879_v16  ;;  %3598 = vmatpush3.bf16.msra.mxu0 %v3880_v17 }
 0x3a5   :  { %3557 = vmatprep.subr.bf16.mxu1 %v3987_v57 }
 0x3a7   :  { %3554 = vmatmul.mubr.msk.bf16.vlgmr.msra.gmra.mrb[8].mxu1 %vm628_vm0, %v4344_v15  ;;  %3600 = vmatmul.mubr.msk.bf16.vlgmr.msra.gmra.mrb[12].mxu0 %vm628_vm0, %v4344_v15 }
 0x3a8   :  { %3558 = vmatpush3.bf16.msra.mxu1 %v3881_v18  ;;  %3561 = vmatprep.mubr.msk.bf16.mxu1 %vm3988_vm2, %v3987_v57 }
 0x3a9   :  { %3559 = vmatprep.subr.bf16.mxu1 %v3987_v57 }
 0x3ac   :  { %3560 = vmatpush3.bf16.msra.mxu1 %v3882_v19 }
 0x3af   :  { %3562 = vmatmul.mubr.msk.bf16.vlgmr.msra.gmra.mrb[12].mxu1 %vm628_vm0, %v4344_v15 }
 0x472   :  { %v780_v21 = vpop.f32.mrb[4].mxu1  ;;  %v4381_v22 = vpop.f32.mrb[8].mxu0 }
 0x473   :  { %v781_v23 = vadd.f32 %v3189_v20, %v780_v21  ;;  %v3547_v24 = vpop.f32.mrb[5].mxu1  ;;  %v3585_v25 = vpop.f32.mrb[9].mxu0 }
 0x474   :  { %v783_v27 = vpop.f32.mrb[6].mxu1  ;;  %v1179_v28 = vpop.f32.mrb[10].mxu0  ;;  %v3883_v25 = vld [vmem:[%s4849_s1 + $0x10] sm:$0xff]  }
 0x475   :  { %v915_v29 = vmul.f32 0.25, %v781_v23  ;;  %v4389_v30 = vadd.f32 %v4386_v26, %v1179_v28  ;;  %v3548_v31 = vpop.f32.mrb[7].mxu1  ;;  %v3586_v32 = vpop.f32.mrb[11].mxu0  ;;  %v784_v55 = vadd.f32 %v3189_v20, %v783_v27  ;;  %v3884_v28 = vld [vmem:[%s4849_s1 + $0x18] sm:$0xff]  }
 0x477   :  { %3569 = vmatprep.mubr.msk.f32.mxu1 %vm917_vm3, %v915_v29  ;;  %v916_v62 = vmul.f32 0.25, %v784_v55  ;;  %v1177_v29 = vadd.f32 %v4386_v26, %v4381_v22 }
 0x479   :  { %v1315_v31 = vmul.f32 0.25, %v1177_v29 }
 0x47a   :  { %v844_v34 = vpop.f32.mrb[8].mxu1  ;;  %v1308_v36 = vpop.f32.mrb[12].mxu0 }
 0x47b   :  { %v3555_v37 = vpop.f32.mrb[9].mxu1  ;;  %v3601_v38 = vpop.f32.mrb[13].mxu0  ;;  %v845_v42 = vadd.f32 %v3193_v33, %v844_v34  ;;  %v1309_v43 = vadd.f32 %v3231_v35, %v1308_v36 }
 0x47c   :  { %v847_v39 = vpop.f32.mrb[10].mxu1  ;;  %v1311_v41 = vpop.f32.mrb[14].mxu0 }
 0x47d   :  { %v848_v45 = vadd.f32 %v3193_v33, %v847_v39  ;;  %v1312_v46 = vadd.f32 %v3231_v35, %v1311_v41  ;;  %v3556_v47 = vpop.f32.mrb[11].mxu1  ;;  %v3602_v48 = vpop.f32.mrb[15].mxu0  ;;  %v3222_v35 = vld [vmem:[%s4808_s11 + $0x1] ss:$0 sm:$0xff] }
 0x47f   :  { %v3765_v51 = vpack.c.bf16 %v848_v45, %v845_v42  ;;  %v3783_v52 = vpack.c.bf16 %v1312_v46, %v1309_v43 }
 0x481   :  { %3767 = vmatprep.subr.msk.bf16.mxu1 %vm4400_vm5, %v3765_v51  ;;  %3785 = vmatprep.subr.msk.bf16.mxu0 %vm4404_vm7, %v3783_v52 }
 0x482   :  { %v908_v54 = vpop.f32.mrb[12].mxu1  ;;  %3770 = vmatpush3.bf16.xpose.msk.msra.mxu1 %vm4400_vm5, %v3765_v51  ;;  %3788 = vmatpush3.bf16.msk.msra.mxu0 %vm4404_vm7, %v3783_v52 }
 0x483   :  { %v3563_v56 = vpop.f32.mrb[13].mxu1  ;;  %3623 = vmatprep.subr.bf16.mxu0 %v3987_v57  ;;  %v909_v59 = vadd.f32 %v3197_v53, %v908_v54 }
 0x484   :  { %v911_v58 = vpop.f32.mrb[14].mxu1 }
 0x485   :  { %v912_v60 = vadd.f32 %v3197_v53, %v911_v58  ;;  %v3564_v61 = vpop.f32.mrb[15].mxu1 }
 0x487   :  { %v3771_v63 = vpack.c.bf16 %v912_v60, %v909_v59 }
 0x489   :  { %3570 = vmatmul.mubr.msk.f32.vlgmr.msra.gmra.mrb[16].mxu1 %vm917_vm3, %v916_v62  ;;  %3773 = vmatprep.subr.msk.bf16.mxu1 %vm4404_vm7, %v3771_v63 }
 0x48a   :  { %3776 = vmatpush3.bf16.msk.msra.mxu1 %vm4404_vm7, %v3771_v63 }
 0x48b   :  { %3587 = vmatprep.subr.bf16.mxu1 %v3987_v57 }
 0x55c   :  { %v3571_v2 = vpop.f32.mrb[16].mxu1 }
 0x55d   :  { %v1002_v3 = vadd.f32 %v3571_v2, %v4429_v0  ;;  %v996_v4 = vpop.f32.mrb[17].mxu1 }
 0x55e   :  { %v997_v5 = vadd.f32 %v996_v4, %v4434_v1  ;;  %v3885_v4 = vld [vmem:[%s4811_s14] sm:$0xff]  }
 0x55f   :  { %v1010_v6 = vsel %vm1009_vm8, %v1002_v3, -inf }
 0x560   :  { %1011 = vmax.xlane.f32.xlu1 %v1010_v6  ;;  %v1006_v7 = vsel %vm1005_vm9, %v997_v5, -inf  ;;  %v3886_v6 = vld [vmem:[%s4811_s14 + $0x8] sm:$0xff]  }
 0x561   :  { %1007 = vmax.xlane.f32.xlu0 %v1006_v7 }
 0x5ed   :  { %v1012_v8 = vpop.xlane.xlu1 %1011 }
 0x5ee   :  { %v1014_v9 = vsub.f32 %v1002_v3, %v1012_v8  ;;  %v1008_v10 = vpop.xlane.xlu0 %1007 }
 0x5ef   :  { %v1013_v11 = vsub.f32 %v997_v5, %v1008_v10 }
 0x5f0   :  { %v1017_v12 = vmul.f32 1.442695, %v1014_v9 }
 0x5f1   :  { %v1015_v13 = vmul.f32 1.442695, %v1013_v11 }
 0x5f2   :  { %3923 = vpow2.f32 %v1017_v12 }
 0x5f3   :  { %3925 = vpow2.f32 %v1015_v13 }
 0x5fc   :  { %v3924_v14 = vpop.eup %3923 }
 0x5fd   :  { %v3926_v16 = vpop.eup %3925  ;;  %v1022_v17 = vsel %vm1009_vm8, %v3924_v14, 0.0 }
 0x5fe   :  { %1023 = vadd.xlane.f32.xlu1 %v1022_v17  ;;  %v1019_v18 = vsel %vm1005_vm9, %v3926_v16, 0.0 }
 0x5ff   :  { %1020 = vadd.xlane.f32.xlu0 %v1019_v18  ;;  %v3248_v18 = vld [vmem:[%s4812_s15] ss:$0 sm:$0xff] }
 0x68b   :  { %v1024_v19 = vpop.xlane.xlu1 %1023 }
 0x68c   :  { %3927 = vrcp.f32 %v1024_v19  ;;  %v1021_v20 = vpop.xlane.xlu0 %1020 }
 0x68d   :  { %3929 = vrcp.f32 %v1021_v20 }
 0x696   :  { %v3928_v21 = vpop.eup %3927 }
 0x697   :  { %v3930_v23 = vpop.eup %3929  ;;  %v1028_v27 = vmul.f32 %v3928_v21, %v3924_v14 }
 0x698   :  { %v1027_v24 = vmul.f32 %v3930_v23, %v3926_v16 }
 0x69a   :  { %3576 = vmatprep.mubr.msk.f32.mxu1 %vm1005_vm9, %v1027_v24 }
 0x69b   :  { %3577 = vmatmul.mubr.msk.f32.vlgmr.msra.gmra.mrb[18].mxu1 %vm1005_vm9, %v1028_v27 }
 0x69c   :  { %3588 = vmatpush3.bf16.msra.mxu1 %v3883_v25  ;;  %3591 = vmatprep.mubr.msk.bf16.mxu1 %vm3988_vm2, %v3987_v57 }
 0x69d   :  { %3589 = vmatprep.subr.bf16.mxu1 %v3987_v57 }
 0x6a0   :  { %3590 = vmatpush3.bf16.msra.mxu1 %v3884_v28 }
 0x6a3   :  { %3592 = vmatmul.mubr.msk.bf16.vlgmr.msra.gmra.mrb[20].mxu1 %vm628_vm0, %v4344_v15  ;;  %v1316_v15 = vmul.f32 0.25, %v4389_v30 }
 0x6a4   :  { %3607 = vmatprep.mubr.msk.f32.mxu1 %vm917_vm3, %v1315_v31 }
 0x76e   :  { %v3578_v32 = vpop.f32.mrb[18].mxu1 }
 0x76f   :  { %v1105_v33 = vpop.f32.mrb[19].mxu1 }
 0x770   :  { %v1114_v34 = vpack.c.bf16 %v3578_v32, %v1105_v33 }
 0x776   :  { %v1242_v36 = vpop.f32.mrb[20].mxu1 }
 0x777   :  { %v3593_v37 = vpop.f32.mrb[21].mxu1  ;;  %v1243_v39 = vadd.f32 %v3222_v35, %v1242_v36 }
 0x778   :  { %v1245_v38 = vpop.f32.mrb[22].mxu1 }
 0x779   :  { %v1246_v41 = vadd.f32 %v3222_v35, %v1245_v38  ;;  %v3594_v22 = vpop.f32.mrb[23].mxu1 }
 0x77b   :  { %v3777_v26 = vpack.c.bf16 %v1246_v41, %v1243_v39  ;;  %v3887_v39 = vld [vmem:[%s4813_s18] sm:$0xff]   ;;  %v3888_v41 = vld [vmem:[%s4813_s18 + $0x8] sm:$0xff]  }
 0x77d   :  { %3779 = vmatprep.subr.msk.bf16.mxu1 %vm4400_vm5, %v3777_v26 }
 0x77e   :  { %3782 = vmatpush3.bf16.xpose.msk.msra.mxu1 %vm4400_vm5, %v3777_v26 }
 0x77f   :  { %3617 = vmatprep.subr.bf16.mxu1 %v3987_v57 }
 0x785   :  { %3608 = vmatmul.mubr.msk.f32.vlgmr.msra.gmra.mrb[24].mxu1 %vm917_vm3, %v1316_v15 }
 0x786   :  { %3619 = vmatprep.mubr.msk.bf16.mxu1 %vm3988_vm2, %v3987_v57  ;;  %3618 = vmatpush3.bf16.msra.mxu1 %v3886_v6 }
 0x787   :  { %3629 = vmatprep.subr.bf16.mxu1 %v3987_v57 }
 0x858   :  { %v3609_v42 = vpop.f32.mrb[24].mxu1 }
 0x859   :  { %v1401_v43 = vadd.f32 %v3609_v42, %v4429_v0  ;;  %v1395_v45 = vpop.f32.mrb[25].mxu1 }
 0x85a   :  { %v1396_v46 = vadd.f32 %v1395_v45, %v4434_v1 }
 0x85b   :  { %v1407_v47 = vsel %vm1009_vm8, %v1401_v43, -inf }
 0x85c   :  { %1408 = vmax.xlane.f32.xlu1 %v1407_v47  ;;  %v1404_v48 = vsel %vm1005_vm9, %v1396_v46, -inf  ;;  %v3249_v47 = vld [vmem:[%s4814_s16] ss:$0 sm:$0xff] }
 0x85d   :  { %1405 = vmax.xlane.f32.xlu0 %v1404_v48 }
 0x8e9   :  { %v1409_v51 = vpop.xlane.xlu1 %1408 }
 0x8ea   :  { %v1411_v52 = vsub.f32 %v1401_v43, %v1409_v51  ;;  %v1406_v30 = vpop.xlane.xlu0 %1405 }
 0x8eb   :  { %v1410_v53 = vsub.f32 %v1396_v46, %v1406_v30 }
 0x8ec   :  { %v1414_v54 = vmul.f32 1.442695, %v1411_v52 }
 0x8ed   :  { %v1412_v55 = vmul.f32 1.442695, %v1410_v53  ;;  %v3250_v53 = vld [vmem:[%s4815_s17] ss:$0 sm:$0xff] }
 0x8ee   :  { %3931 = vpow2.f32 %v1414_v54 }
 0x8ef   :  { %3933 = vpow2.f32 %v1412_v55 }
 0x8f8   :  { %v3932_v56 = vpop.eup %3931 }
 0x8f9   :  { %v3934_v58 = vpop.eup %3933  ;;  %v1419_v59 = vsel %vm1009_vm8, %v3932_v56, 0.0 }
 0x8fa   :  { %1420 = vadd.xlane.f32.xlu1 %v1419_v59  ;;  %v1416_v60 = vsel %vm1005_vm9, %v3934_v58, 0.0  ;;  %v3889_v59 = vld [vmem:[%s4816_s20] sm:$0xff]  }
 0x8fb   :  { %1417 = vadd.xlane.f32.xlu0 %v1416_v60  ;;  %v3890_v60 = vld [vmem:[%s4816_s20 + $0x8] sm:$0xff]  }
 0x987   :  { %v1421_v61 = vpop.xlane.xlu1 %1420 }
 0x988   :  { %3935 = vrcp.f32 %v1421_v61  ;;  %v1418_v62 = vpop.xlane.xlu0 %1417  ;;  %v3891_v61 = vld [vmem:[%s4816_s20 + $0x10] sm:$0xff]  }
 0x989   :  { %3937 = vrcp.f32 %v1418_v62  ;;  %v3892_v62 = vld [vmem:[%s4816_s20 + $0x18] sm:$0xff]  }
 0x992   :  { %v3936_v63 = vpop.eup %3935 }
 0x993   :  { %v3938_v2 = vpop.eup %3937  ;;  %v1425_v5 = vmul.f32 %v3936_v63, %v3932_v56  ;;  %v3251_v63 = vld [vmem:[%s4817_s19] ss:$0 sm:$0xff] }
 0x994   :  { %v1424_v3 = vmul.f32 %v3938_v2, %v3934_v58 }
 0x996   :  { %3614 = vmatprep.mubr.msk.f32.mxu0 %vm1005_vm9, %v1424_v3 }
 0x997   :  { %3615 = vmatmul.mubr.msk.f32.vlgmr.msra.gmra.mrb[16].mxu0 %vm1005_vm9, %v1425_v5 }
 0x998   :  { %3624 = vmatpush3.bf16.msra.mxu0 %v3885_v4  ;;  %3625 = vmatprep.mubr.msk.bf16.mxu0 %vm3988_vm2, %v3987_v57 }
 0x999   :  { %3637 = vmatprep.subr.bf16.mxu0 %v3987_v57 }
 0x99b   :  { %3626 = vmatmul.mubr.msk.bf16.vlgmr.msra.gmra.mrb[20].mxu0 %vm917_vm3, %v1114_v34 }
 0x99c   :  { %3645 = vmatprep.mubr.msk.bf16.mxu0 %vm3988_vm2, %v3987_v57  ;;  %3638 = vmatpush3.bf16.msra.mxu0 %v3889_v59 }
 0x99d   :  { %3639 = vmatprep.subr.bf16.mxu0 %v3987_v57 }
 0x9a0   :  { %3640 = vmatpush3.bf16.msra.mxu0 %v3890_v60 }
 0x9a1   :  { %3641 = vmatprep.subr.bf16.mxu0 %v3987_v57 }
 0x9a4   :  { %3642 = vmatpush3.bf16.msra.mxu0 %v3891_v61  ;;  %v3266_v61 = vld [vmem:[%s4848_s5 + $0x1] ss:$0 sm:$0xff] }
 0x9a5   :  { %3643 = vmatprep.subr.bf16.mxu0 %v3987_v57 }
 0x9a8   :  { %3644 = vmatpush3.bf16.msra.mxu0 %v3892_v62 }
 0x9a9   :  { %3665 = vmatprep.subr.bf16.mxu0 %v3987_v57 }
 0xa6a   :  { %v3616_v7 = vpop.f32.mrb[16].mxu0 }
 0xa6b   :  { %v1501_v8 = vpop.f32.mrb[17].mxu0 }
 0xa6c   :  { %v1510_v9 = vpack.c.bf16 %v3616_v7, %v1501_v8 }
 0xa6e   :  { %3620 = vmatmul.mubr.msk.bf16.vlgmr.msra.gmra.mrb[28].mxu1 %vm917_vm3, %v1510_v9  ;;  %v1607_v10 = vpop.f32.mrb[20].mxu0 }
 0xa6f   :  { %v3627_v11 = vpop.f32.mrb[21].mxu0  ;;  %3633 = vmatprep.mubr.msk.bf16.mxu1 %vm3988_vm2, %v3987_v57  ;;  %3630 = vmatpush3.bf16.msra.mxu1 %v3887_v39 }
 0xa70   :  { %v1610_v12 = vpop.f32.mrb[22].mxu0  ;;  %3631 = vmatprep.subr.bf16.mxu1 %v3987_v57 }
 0xa71   :  { %v3628_v13 = vpop.f32.mrb[23].mxu0 }
 0xa73   :  { %3632 = vmatpush3.bf16.msra.mxu1 %v3888_v41 }
 0xa74   :  { %3649 = vmatprep.subr.bf16.mxu1 %v3987_v57 }
 0xb41   :  { %v1557_v14 = vpop.f32.mrb[28].mxu1 }
 0xb42   :  { %v1608_v16 = vadd.f32 %v1607_v10, %v1557_v14  ;;  %v3621_v17 = vpop.f32.mrb[29].mxu1 }
 0xb43   :  { %v1560_v19 = vpop.f32.mrb[30].mxu1 }
 0xb44   :  { %v1614_v20 = vadd.f32 %v1608_v16, %v4298_v40  ;;  %v1611_v21 = vadd.f32 %v1610_v12, %v1560_v19  ;;  %v3622_v23 = vpop.f32.mrb[31].mxu1 }
 0xb46   :  { %v4498_v24 = vadd.f32 %v3248_v18, %v1614_v20  ;;  %v1615_v25 = vadd.f32 %v1611_v21, %v4302_v44 }
 0xb48   :  { %v4501_v27 = vadd.f32 %v3248_v18, %v1615_v25  ;;  %v1627_v28 = vsel %vm628_vm0, %v4498_v24, 0.0  ;;  %v3262_v25 = vld [vmem:[%s4818_s21] ss:$0 sm:$0xff] }
 0xb49   :  { %1628 = vadd.xlane.f32.xlu0 %v1627_v28 }
 0xb4a   :  { %v1630_v29 = vsel %vm632_vm1, %v4501_v27, 0.0 }
 0xb4b   :  { %1631 = vadd.xlane.f32.xlu1 %v1630_v29 }
 0xbd6   :  { %v1629_v31 = vpop.xlane.xlu0 %1628 }
 0xbd7   :  { %v1633_v32 = vmul.f32 0.03125, %v1629_v31 }
 0xbd8   :  { %v1632_v33 = vpop.xlane.xlu1 %1631 }
 0xbd9   :  { %v1635_v40 = vsub.f32 %v4498_v24, %v1633_v32  ;;  %v1634_v34 = vmul.f32 0.03125, %v1632_v33 }
 0xbdb   :  { %v1636_v35 = vsub.f32 %v4501_v27, %v1634_v34  ;;  %v1637_v36 = vmul.f32 %v1635_v40, %v1635_v40 }
 0xbdd   :  { %v1639_v44 = vsel %vm628_vm0, %v1637_v36, 0.0  ;;  %v1638_v37 = vmul.f32 %v1636_v35, %v1636_v35 }
 0xbde   :  { %1640 = vadd.xlane.f32.xlu0 %v1639_v44 }
 0xbdf   :  { %v1642_v38 = vsel %vm632_vm1, %v1638_v37, 0.0 }
 0xbe0   :  { %1643 = vadd.xlane.f32.xlu1 %v1642_v38 }
 0xc6b   :  { %v1641_v22 = vpop.xlane.xlu0 %1640 }
 0xc6c   :  { %v1645_v26 = vmul.f32 0.03125, %v1641_v22 }
 0xc6d   :  { %v1644_v15 = vpop.xlane.xlu1 %1643 }
 0xc6e   :  { %v1647_v42 = vadd.f32 1e-05, %v1645_v26  ;;  %v1646_v43 = vmul.f32 0.03125, %v1644_v15 }
 0xc70   :  { %3939 = vrsqrt.f32 %v1647_v42  ;;  %v1648_v45 = vadd.f32 1e-05, %v1646_v43  ;;  %v3893_v42 = vld [vmem:[%s4846_s8 + $0x20] sm:$0xff]  }
 0xc71   :  { %v3894_v43 = vld [vmem:[%s4850_s30 + $0x20] sm:$0xff]  }
 0xc72   :  { %3941 = vrsqrt.f32 %v1648_v45  ;;  %v3895_v45 = vld [vmem:[%s4846_s8 + $0x28] sm:$0xff]  }
 0xc7a   :  { %v3940_v46 = vpop.eup %3939 }
 0xc7b   :  { %v1651_v48 = vmul.f32 %v3940_v46, %v1635_v40  ;;  %v3896_v46 = vld [vmem:[%s4850_s30 + $0x28] sm:$0xff]  }
 0xc7c   :  { %v3942_v51 = vpop.eup %3941 }
 0xc7d   :  { %v1659_v52 = vmul.f32 %v3249_v47, %v1651_v48  ;;  %v1652_v30 = vmul.f32 %v3942_v51, %v1636_v35 }
 0xc7f   :  { %v1660_v54 = vmul.f32 %v3249_v47, %v1652_v30  ;;  %v1667_v55 = vadd.f32 %v3250_v53, %v1659_v52 }
 0xc81   :  { %v1668_v56 = vadd.f32 %v3250_v53, %v1660_v54 }
 0xc83   :  { %v1669_v58 = vpack.c.bf16 %v1668_v56, %v1667_v55  ;;  %v3265_v55 = vld [vmem:[%s4847_s26 + $0x1] ss:$0 sm:$0xff] }
 0xc85   :  { %3634 = vmatmul.mubr.msk.bf16.vlgmr.msra.gmra.mrb[32].mxu1 %vm628_vm0, %v1669_v58 }
 0xc86   :  { %3653 = vmatprep.mubr.msk.bf16.mxu1 %vm3988_vm2, %v3987_v57  ;;  %3650 = vmatpush3.bf16.msra.mxu1 %v3893_v42 }
 0xc87   :  { %3651 = vmatprep.subr.bf16.mxu1 %v3987_v57 }
 0xc8a   :  { %3652 = vmatpush3.bf16.msra.mxu1 %v3895_v45 }
 0xc8b   :  { %3657 = vmatprep.subr.bf16.mxu1 %v3987_v57 }
 0xd58   :  { %v1730_v2 = vpop.f32.mrb[32].mxu1 }
 0xd59   :  { %v1731_v3 = vadd.f32 %v3251_v63, %v1730_v2  ;;  %v3635_v4 = vpop.f32.mrb[33].mxu1 }
 0xd5a   :  { %v1733_v5 = vpop.f32.mrb[34].mxu1 }
 0xd5b   :  { %v3255_v6 = vmul.f32 -1.702, %v1731_v3  ;;  %v1734_v7 = vadd.f32 %v3251_v63, %v1733_v5  ;;  %v3636_v8 = vpop.f32.mrb[35].mxu1  ;;  %v3898_v5 = vld [vmem:[%s4849_s1 + $0x28] sm:$0xff]  }
 0xd5c   :  { %v3290_v8 = vld [vmem:[%s4809_s13 + $0x2] ss:$0 sm:$0xff] }
 0xd5d   :  { %v1741_v9 = vmul.f32 1.442695, %v3255_v6  ;;  %v3256_v10 = vmul.f32 -1.702, %v1734_v7  ;;  %v3272_v6 = vld [vmem:[%s4807_s9 + $0x2] ss:$0 sm:$0xff] }
 0xd5f   :  { %3943 = vpow2.f32 %v1741_v9  ;;  %v1743_v11 = vmul.f32 1.442695, %v3256_v10 }
 0xd61   :  { %3945 = vpow2.f32 %v1743_v11 }
 0xd69   :  { %v3944_v12 = vpop.eup %3943 }
 0xd6a   :  { %v1745_v13 = vadd.f32 1.0, %v3944_v12 }
 0xd6b   :  { %v3946_v14 = vpop.eup %3945 }
 0xd6c   :  { %3947 = vrcp.f32 %v1745_v13  ;;  %v1746_v16 = vadd.f32 1.0, %v3946_v14 }
 0xd6e   :  { %3949 = vrcp.f32 %v1746_v16 }
 0xd76   :  { %v3948_v17 = vpop.eup %3947 }
 0xd77   :  { %v1751_v19 = vmul.f32 %v3948_v17, %v1731_v3  ;;  %v3897_v3 = vld [vmem:[%s4849_s1 + $0x20] sm:$0xff]  }
 0xd78   :  { %v3950_v18 = vpop.eup %3949 }
 0xd79   :  { %v1752_v20 = vmul.f32 %v3950_v18, %v1734_v7 }
 0xd7b   :  { %v1753_v21 = vpack.c.bf16 %v1752_v20, %v1751_v19 }
 0xd7d   :  { %3646 = vmatmul.mubr.msk.bf16.vlgmr.msra.gmra.mrb[24].mxu0 %vm1786_vm10, %v1753_v21 }
 0xd7e   :  { %3669 = vmatprep.mubr.msk.bf16.mxu0 %vm3988_vm2, %v3987_v57  ;;  %3666 = vmatpush3.bf16.msra.mxu0 %v3894_v43 }
 0xd7f   :  { %3667 = vmatprep.subr.bf16.mxu0 %v3987_v57 }
 0xd82   :  { %3668 = vmatpush3.bf16.msra.mxu0 %v3896_v46  ;;  %v3308_v46 = vld [vmem:[%s4807_s9 + $0x3] ss:$0 sm:$0xff] }
 0xe50   :  { %v1824_v23 = vpop.f32.mrb[24].mxu0 }
 0xe51   :  { %v1831_v28 = vadd.f32 %v1824_v23, %v4498_v24  ;;  %v3647_v29 = vpop.f32.mrb[25].mxu0  ;;  %v3281_v23 = vld [vmem:[%s4808_s11 + $0x2] ss:$0 sm:$0xff] }
 0xe52   :  { %v1827_v31 = vpop.f32.mrb[26].mxu0 }
 0xe53   :  { %v4554_v32 = vadd.f32 %v3262_v25, %v1831_v28  ;;  %v1832_v33 = vadd.f32 %v1827_v31, %v4501_v27  ;;  %v3648_v40 = vpop.f32.mrb[27].mxu0 }
 0xe55   :  { %v4557_v34 = vadd.f32 %v3262_v25, %v1832_v33  ;;  %v1846_v35 = vsel %vm628_vm0, %v4554_v32, 0.0 }
 0xe56   :  { %1847 = vadd.xlane.f32.xlu0 %v1846_v35 }
 0xe57   :  { %v1849_v36 = vsel %vm632_vm1, %v4557_v34, 0.0 }
 0xe58   :  { %1850 = vadd.xlane.f32.xlu1 %v1849_v36 }
 0xee3   :  { %v1848_v44 = vpop.xlane.xlu0 %1847 }
 0xee4   :  { %v1852_v37 = vmul.f32 0.03125, %v1848_v44  ;;  %v3899_v44 = vld [vmem:[%s4846_s8 + $0x30] sm:$0xff]  }
 0xee5   :  { %v1851_v24 = vpop.xlane.xlu1 %1850 }
 0xee6   :  { %v1854_v38 = vsub.f32 %v4554_v32, %v1852_v37  ;;  %v1853_v39 = vmul.f32 0.03125, %v1851_v24  ;;  %v3900_v24 = vld [vmem:[%s4846_s8 + $0x38] sm:$0xff]  }
 0xee8   :  { %v1855_v41 = vsub.f32 %v4557_v34, %v1853_v39  ;;  %v1856_v27 = vmul.f32 %v1854_v38, %v1854_v38  ;;  %v3902_v39 = vld [vmem:[%s4850_s30 + $0x38] sm:$0xff]  }
 0xeea   :  { %v1858_v22 = vsel %vm628_vm0, %v1856_v27, 0.0  ;;  %v1857_v26 = vmul.f32 %v1855_v41, %v1855_v41 }
 0xeeb   :  { %1859 = vadd.xlane.f32.xlu0 %v1858_v22 }
 0xeec   :  { %v1861_v15 = vsel %vm632_vm1, %v1857_v26, 0.0 }
 0xeed   :  { %1862 = vadd.xlane.f32.xlu1 %v1861_v15 }
 0xf78   :  { %v1860_v47 = vpop.xlane.xlu0 %1859 }
 0xf79   :  { %v1864_v48 = vmul.f32 0.03125, %v1860_v47 }
 0xf7a   :  { %v1863_v51 = vpop.xlane.xlu1 %1862 }
 0xf7b   :  { %v1866_v52 = vadd.f32 1e-05, %v1864_v48  ;;  %v1865_v30 = vmul.f32 0.03125, %v1863_v51 }
 0xf7d   :  { %3951 = vrsqrt.f32 %v1866_v52  ;;  %v1867_v53 = vadd.f32 1e-05, %v1865_v30  ;;  %v3326_v52 = vld [vmem:[%s4809_s13 + $0x3] ss:$0 sm:$0xff] }
 0xf7f   :  { %3953 = vrsqrt.f32 %v1867_v53 }
 0xf87   :  { %v3952_v54 = vpop.eup %3951 }
 0xf88   :  { %v1870_v56 = vmul.f32 %v3952_v54, %v1854_v38  ;;  %v3901_v38 = vld [vmem:[%s4850_s30 + $0x30] sm:$0xff]  }
 0xf89   :  { %v3954_v58 = vpop.eup %3953 }
 0xf8a   :  { %v1878_v59 = vmul.f32 %v3265_v55, %v1870_v56  ;;  %v1871_v60 = vmul.f32 %v3954_v58, %v1855_v41 }
 0xf8c   :  { %v1879_v62 = vmul.f32 %v3265_v55, %v1871_v60  ;;  %v1886_v63 = vadd.f32 %v3266_v61, %v1878_v59 }
 0xf8e   :  { %v1887_v2 = vadd.f32 %v3266_v61, %v1879_v62 }
 0xf90   :  { %v4591_v4 = vpack.c.bf16 %v1887_v2, %v1886_v63 }
 0xf92   :  { %3654 = vmatmul.mubr.msk.bf16.vlgmr.msra.gmra.mrb[36].mxu1 %vm628_vm0, %v4591_v4  ;;  %3670 = vmatmul.mubr.msk.bf16.vlgmr.msra.gmra.mrb[28].mxu0 %vm628_vm0, %v4591_v4 }
 0xf93   :  { %3658 = vmatpush3.bf16.msra.mxu1 %v3897_v3  ;;  %3661 = vmatprep.mubr.msk.bf16.mxu1 %vm3988_vm2, %v3987_v57 }
 0xf94   :  { %3659 = vmatprep.subr.bf16.mxu1 %v3987_v57 }
 0xf97   :  { %3660 = vmatpush3.bf16.msra.mxu1 %v3898_v5 }
 0xf9a   :  { %3662 = vmatmul.mubr.msk.bf16.vlgmr.msra.gmra.mrb[40].mxu1 %vm628_vm0, %v4591_v4 }
0x1065   :  { %v1951_v7 = vpop.f32.mrb[36].mxu1  ;;  %v2083_v9 = vpop.f32.mrb[28].mxu0 }
0x1066   :  { %v1952_v10 = vadd.f32 %v3272_v6, %v1951_v7  ;;  %v3655_v11 = vpop.f32.mrb[37].mxu1  ;;  %v3671_v12 = vpop.f32.mrb[29].mxu0  ;;  %v2084_v17 = vadd.f32 %v3290_v8, %v2083_v9 }
0x1067   :  { %v1954_v13 = vpop.f32.mrb[38].mxu1  ;;  %v2086_v14 = vpop.f32.mrb[30].mxu0 }
0x1068   :  { %v2090_v16 = vmul.f32 0.25, %v1952_v10  ;;  %v2087_v18 = vadd.f32 %v3290_v8, %v2086_v14  ;;  %v3656_v19 = vpop.f32.mrb[39].mxu1  ;;  %v3672_v20 = vpop.f32.mrb[31].mxu0  ;;  %v1955_v36 = vadd.f32 %v3272_v6, %v1954_v13  ;;  %v3903_v14 = vld [vmem:[%s4849_s1 + $0x30] sm:$0xff]  }
0x106a   :  { %v3795_v21 = vpack.c.bf16 %v2087_v18, %v2084_v17  ;;  %3677 = vmatprep.mubr.msk.f32.mxu1 %vm917_vm3, %v2090_v16  ;;  %v2091_v37 = vmul.f32 0.25, %v1955_v36  ;;  %v3904_v17 = vld [vmem:[%s4849_s1 + $0x38] sm:$0xff]  }
0x106c   :  { %3797 = vmatprep.subr.msk.bf16.mxu0 %vm4404_vm7, %v3795_v21 }
0x106d   :  { %v2017_v25 = vpop.f32.mrb[40].mxu1  ;;  %3800 = vmatpush3.bf16.msk.msra.mxu0 %vm4404_vm7, %v3795_v21 }
0x106e   :  { %v3663_v28 = vpop.f32.mrb[41].mxu1  ;;  %3695 = vmatprep.subr.bf16.mxu0 %v3987_v57  ;;  %v2018_v31 = vadd.f32 %v3281_v23, %v2017_v25  ;;  %v3317_v25 = vld [vmem:[%s4808_s11 + $0x3] ss:$0 sm:$0xff] }
0x106f   :  { %v2020_v29 = vpop.f32.mrb[42].mxu1 }
0x1070   :  { %v2021_v33 = vadd.f32 %v3281_v23, %v2020_v29  ;;  %v3664_v40 = vpop.f32.mrb[43].mxu1 }
0x1072   :  { %v3789_v35 = vpack.c.bf16 %v2021_v33, %v2018_v31 }
0x1074   :  { %3791 = vmatprep.subr.msk.bf16.mxu1 %vm4400_vm5, %v3789_v35 }
0x1075   :  { %3794 = vmatpush3.bf16.xpose.msk.msra.mxu1 %vm4400_vm5, %v3789_v35 }
0x1076   :  { %3687 = vmatprep.subr.bf16.mxu1 %v3987_v57 }
0x107c   :  { %3678 = vmatmul.mubr.msk.f32.vlgmr.msra.gmra.mrb[26].mxu1 %vm917_vm3, %v2091_v37 }
0x107d   :  { %3688 = vmatpush3.bf16.msra.mxu1 %v3899_v44  ;;  %3691 = vmatprep.mubr.msk.bf16.mxu1 %vm3988_vm2, %v3987_v57 }
0x107e   :  { %3689 = vmatprep.subr.bf16.mxu1 %v3987_v57 }
0x1081   :  { %3690 = vmatpush3.bf16.msra.mxu1 %v3900_v24 }
0x1082   :  { %3703 = vmatprep.subr.bf16.mxu1 %v3987_v57 }
0x1084   :  { %3692 = vmatmul.mubr.msk.bf16.vlgmr.msra.gmra.mrb[44].mxu1 %vm628_vm0, %v4591_v4 }
0x1085   :  { %3704 = vmatpush3.bf16.msra.mxu1 %v3901_v38  ;;  %3707 = vmatprep.mubr.msk.bf16.mxu1 %vm3988_vm2, %v3987_v57 }
0x1086   :  { %3705 = vmatprep.subr.bf16.mxu1 %v3987_v57 }
0x1089   :  { %3706 = vmatpush3.bf16.msra.mxu1 %v3902_v39 }
0x108a   :  { %3725 = vmatprep.subr.bf16.mxu1 %v3987_v57 }
0x108c   :  { %3708 = vmatmul.mubr.msk.bf16.vlgmr.msra.gmra.mrb[48].mxu1 %vm628_vm0, %v4591_v4 }
0x108d   :  { %3727 = vmatprep.mubr.msk.bf16.mxu1 %vm3988_vm2, %v3987_v57 }
0x114f   :  { %v3679_v41 = vpop.f32.mrb[26].mxu1 }
0x1150   :  { %v2176_v27 = vadd.f32 %v3679_v41, %v4429_v0  ;;  %v2170_v22 = vpop.f32.mrb[27].mxu1 }
0x1151   :  { %v2171_v26 = vadd.f32 %v2170_v22, %v4434_v1 }
0x1152   :  { %v2182_v15 = vsel %vm1009_vm8, %v2176_v27, -inf }
0x1153   :  { %2183 = vmax.xlane.f32.xlu1 %v2182_v15  ;;  %v2179_v42 = vsel %vm1005_vm9, %v2171_v26, -inf }
0x1154   :  { %2180 = vmax.xlane.f32.xlu0 %v2179_v42 }
0x1157   :  { %v2348_v43 = vpop.f32.mrb[44].mxu1 }
0x1158   :  { %v3693_v45 = vpop.f32.mrb[45].mxu1  ;;  %v2349_v18 = vadd.f32 %v3308_v46, %v2348_v43 }
0x1159   :  { %v2351_v47 = vpop.f32.mrb[46].mxu1  ;;  %v3906_v45 = vld [vmem:[%s4811_s14 + $0x18] sm:$0xff]  }
0x115a   :  { %v2352_v48 = vadd.f32 %v3308_v46, %v2351_v47  ;;  %v3694_v51 = vpop.f32.mrb[47].mxu1  ;;  %v2487_v19 = vmul.f32 0.25, %v2349_v18  ;;  %3726 = vmatpush3.bf16.msra.mxu1 %v3906_v45 }
0x115b   :  { %3737 = vmatprep.subr.bf16.mxu1 %v3987_v57 }
0x115f   :  { %v2480_v30 = vpop.f32.mrb[48].mxu1 }
0x1160   :  { %v3709_v53 = vpop.f32.mrb[49].mxu1  ;;  %v2481_v55 = vadd.f32 %v3326_v52, %v2480_v30  ;;  %v3905_v30 = vld [vmem:[%s4811_s14 + $0x10] sm:$0xff]  }
0x1161   :  { %v2483_v54 = vpop.f32.mrb[50].mxu1 }
0x1162   :  { %v2484_v56 = vadd.f32 %v3326_v52, %v2483_v54  ;;  %v3710_v58 = vpop.f32.mrb[51].mxu1 }
0x1164   :  { %v3807_v59 = vpack.c.bf16 %v2484_v56, %v2481_v55 }
0x11e0   :  { %v2184_v60 = vpop.xlane.xlu1 %2183 }
0x11e1   :  { %v2186_v61 = vsub.f32 %v2176_v27, %v2184_v60  ;;  %v2181_v62 = vpop.xlane.xlu0 %2180 }
0x11e2   :  { %v2185_v63 = vsub.f32 %v2171_v26, %v2181_v62 }
0x11e3   :  { %v2189_v2 = vmul.f32 1.442695, %v2186_v61 }
0x11e4   :  { %v2187_v3 = vmul.f32 1.442695, %v2185_v63 }
0x11e5   :  { %3955 = vpow2.f32 %v2189_v2 }
0x11e6   :  { %3957 = vpow2.f32 %v2187_v3  ;;  %v3344_v3 = vld [vmem:[%s4812_s15 + $0x1] ss:$0 sm:$0xff] }
0x11ef   :  { %v3956_v5 = vpop.eup %3955 }
0x11f0   :  { %v3958_v6 = vpop.eup %3957  ;;  %v2194_v7 = vsel %vm1009_vm8, %v3956_v5, 0.0 }
0x11f1   :  { %2195 = vadd.xlane.f32.xlu1 %v2194_v7  ;;  %v2191_v8 = vsel %vm1005_vm9, %v3958_v6, 0.0 }
0x11f2   :  { %2192 = vadd.xlane.f32.xlu0 %v2191_v8 }
0x127e   :  { %v2196_v9 = vpop.xlane.xlu1 %2195 }
0x127f   :  { %3959 = vrcp.f32 %v2196_v9  ;;  %v2193_v10 = vpop.xlane.xlu0 %2192 }
0x1280   :  { %3961 = vrcp.f32 %v2193_v10 }
0x1289   :  { %v3960_v11 = vpop.eup %3959 }
0x128a   :  { %v3962_v12 = vpop.eup %3961  ;;  %v2200_v16 = vmul.f32 %v3960_v11, %v3956_v5 }
0x128b   :  { %v2199_v13 = vmul.f32 %v3962_v12, %v3958_v6 }
0x128d   :  { %3684 = vmatprep.mubr.msk.f32.mxu0 %vm1005_vm9, %v2199_v13 }
0x128e   :  { %3685 = vmatmul.mubr.msk.f32.vlgmr.msra.gmra.mrb[18].mxu0 %vm1005_vm9, %v2200_v16 }
0x128f   :  { %3696 = vmatpush3.bf16.msra.mxu0 %v3903_v14  ;;  %3699 = vmatprep.mubr.msk.bf16.mxu0 %vm3988_vm2, %v3987_v57 }
0x1290   :  { %3697 = vmatprep.subr.bf16.mxu0 %v3987_v57 }
0x1293   :  { %3698 = vmatpush3.bf16.msra.mxu0 %v3904_v17 }
0x1296   :  { %3700 = vmatmul.mubr.msk.bf16.vlgmr.msra.gmra.mrb[32].mxu0 %vm628_vm0, %v4591_v4  ;;  %v2488_v4 = vmul.f32 0.25, %v2352_v48 }
0x1297   :  { %3715 = vmatprep.mubr.msk.f32.mxu0 %vm917_vm3, %v2487_v19 }
0x1361   :  { %v3686_v20 = vpop.f32.mrb[18].mxu0 }
0x1362   :  { %v2276_v21 = vpop.f32.mrb[19].mxu0 }
0x1363   :  { %v2285_v23 = vpack.c.bf16 %v3686_v20, %v2276_v21 }
0x1369   :  { %v2414_v28 = vpop.f32.mrb[32].mxu0 }
0x136a   :  { %v3701_v29 = vpop.f32.mrb[33].mxu0  ;;  %v2415_v33 = vadd.f32 %v3317_v25, %v2414_v28  ;;  %v3908_v28 = vld [vmem:[%s4813_s18 + $0x18] sm:$0xff]  }
0x136b   :  { %v2417_v31 = vpop.f32.mrb[34].mxu0 }
0x136c   :  { %v2418_v40 = vadd.f32 %v3317_v25, %v2417_v31  ;;  %v3702_v35 = vpop.f32.mrb[35].mxu0  ;;  %v3907_v25 = vld [vmem:[%s4813_s18 + $0x10] sm:$0xff]  }
0x136e   :  { %v3801_v36 = vpack.c.bf16 %v2418_v40, %v2415_v33 }
0x1370   :  { %3803 = vmatprep.subr.msk.bf16.mxu0 %vm4400_vm5, %v3801_v36 }
0x1371   :  { %3806 = vmatpush3.bf16.xpose.msk.msra.mxu0 %vm4400_vm5, %v3801_v36 }
0x1372   :  { %3809 = vmatprep.subr.msk.bf16.mxu0 %vm4404_vm7, %v3807_v59 }
0x1378   :  { %3716 = vmatmul.mubr.msk.f32.vlgmr.msra.gmra.mrb[36].mxu0 %vm917_vm3, %v2488_v4 }
0x1379   :  { %3812 = vmatpush3.bf16.msk.msra.mxu0 %vm4404_vm7, %v3807_v59 }
0x137a   :  { %3731 = vmatprep.subr.bf16.mxu0 %v3987_v57 }
0x144b   :  { %v3717_v44 = vpop.f32.mrb[36].mxu0 }
0x144c   :  { %v2573_v37 = vadd.f32 %v3717_v44, %v4429_v0  ;;  %v2567_v24 = vpop.f32.mrb[37].mxu0  ;;  %v3347_v44 = vld [vmem:[%s4814_s16 + $0x1] ss:$0 sm:$0xff] }
0x144d   :  { %v2568_v38 = vadd.f32 %v2567_v24, %v4434_v1 }
0x144e   :  { %v2579_v49 = vsel %vm1009_vm8, %v2573_v37, -inf }
0x144f   :  { %2580 = vmax.xlane.f32.xlu1 %v2579_v49  ;;  %v2576_v39 = vsel %vm1005_vm9, %v2568_v38, -inf }
0x1450   :  { %2577 = vmax.xlane.f32.xlu0 %v2576_v39  ;;  %v3348_v39 = vld [vmem:[%s4815_s17 + $0x1] ss:$0 sm:$0xff] }
0x14dc   :  { %v2581_v41 = vpop.xlane.xlu1 %2580 }
0x14dd   :  { %v2583_v27 = vsub.f32 %v2573_v37, %v2581_v41  ;;  %v2578_v22 = vpop.xlane.xlu0 %2577 }
0x14de   :  { %v2582_v26 = vsub.f32 %v2568_v38, %v2578_v22 }
0x14df   :  { %v2586_v50 = vmul.f32 1.442695, %v2583_v27 }
0x14e0   :  { %v2584_v15 = vmul.f32 1.442695, %v2582_v26 }
0x14e1   :  { %3963 = vpow2.f32 %v2586_v50  ;;  %v3909_v50 = vld [vmem:[%s4816_s20 + $0x20] sm:$0xff]  }
0x14e2   :  { %3965 = vpow2.f32 %v2584_v15  ;;  %v3910_v15 = vld [vmem:[%s4816_s20 + $0x28] sm:$0xff]  }
0x14eb   :  { %v3964_v42 = vpop.eup %3963 }
0x14ec   :  { %v3966_v43 = vpop.eup %3965  ;;  %v2591_v0 = vsel %vm1009_vm8, %v3964_v42, 0.0 }
0x14ed   :  { %2592 = vadd.xlane.f32.xlu1 %v2591_v0  ;;  %v2588_v1 = vsel %vm1005_vm9, %v3966_v43, 0.0  ;;  %v3354_v0 = vld [vmem:[%s4817_s19 + $0x1] ss:$0 sm:$0xff] }
0x14ee   :  { %2589 = vadd.xlane.f32.xlu0 %v2588_v1 }
0x157a   :  { %v2593_v46 = vpop.xlane.xlu1 %2592 }
0x157b   :  { %3967 = vrcp.f32 %v2593_v46  ;;  %v2590_v47 = vpop.xlane.xlu0 %2589 }
0x157c   :  { %3969 = vrcp.f32 %v2590_v47 }
0x1585   :  { %v3968_v48 = vpop.eup %3967 }
0x1586   :  { %v3970_v51 = vpop.eup %3969  ;;  %v2597_v53 = vmul.f32 %v3968_v48, %v3964_v42  ;;  %v3911_v42 = vld [vmem:[%s4816_s20 + $0x30] sm:$0xff]  }
0x1587   :  { %v2596_v52 = vmul.f32 %v3970_v51, %v3966_v43  ;;  %v3912_v43 = vld [vmem:[%s4816_s20 + $0x38] sm:$0xff]  }
0x1589   :  { %3722 = vmatprep.mubr.msk.f32.mxu0 %vm1005_vm9, %v2596_v52 }
0x158a   :  { %3723 = vmatmul.mubr.msk.f32.vlgmr.msra.gmra.mrb[38].mxu0 %vm1005_vm9, %v2597_v53 }
0x158b   :  { %3732 = vmatpush3.bf16.msra.mxu0 %v3905_v30  ;;  %3733 = vmatprep.mubr.msk.bf16.mxu0 %vm3988_vm2, %v3987_v57 }
0x158c   :  { %3745 = vmatprep.subr.bf16.mxu0 %v3987_v57 }
0x158e   :  { %3734 = vmatmul.mubr.msk.bf16.vlgmr.msra.gmra.mrb[40].mxu0 %vm917_vm3, %v2285_v23 }
0x158f   :  { %3753 = vmatprep.mubr.msk.bf16.mxu0 %vm3988_vm2, %v3987_v57  ;;  %3746 = vmatpush3.bf16.msra.mxu0 %v3909_v50 }
0x1590   :  { %3747 = vmatprep.subr.bf16.mxu0 %v3987_v57 }
0x1593   :  { %3748 = vmatpush3.bf16.msra.mxu0 %v3910_v15 }
0x1594   :  { %3749 = vmatprep.subr.bf16.mxu0 %v3987_v57 }
0x1597   :  { %3750 = vmatpush3.bf16.msra.mxu0 %v3911_v42 }
0x1598   :  { %3751 = vmatprep.subr.bf16.mxu0 %v3987_v57 }
0x159b   :  { %3752 = vmatpush3.bf16.msra.mxu0 %v3912_v43 }
0x165d   :  { %v3724_v54 = vpop.f32.mrb[38].mxu0 }
0x165e   :  { %v2673_v55 = vpop.f32.mrb[39].mxu0 }
0x165f   :  { %v2682_v56 = vpack.c.bf16 %v3724_v54, %v2673_v55 }
0x1661   :  { %3728 = vmatmul.mubr.msk.bf16.vlgmr.msra.gmra.mrb[52].mxu1 %vm917_vm3, %v2682_v56  ;;  %v2779_v58 = vpop.f32.mrb[40].mxu0 }
0x1662   :  { %v3735_v59 = vpop.f32.mrb[41].mxu0  ;;  %3741 = vmatprep.mubr.msk.bf16.mxu1 %vm3988_vm2, %v3987_v57  ;;  %3738 = vmatpush3.bf16.msra.mxu1 %v3907_v25 }
0x1663   :  { %v2782_v60 = vpop.f32.mrb[42].mxu0  ;;  %3739 = vmatprep.subr.bf16.mxu1 %v3987_v57 }
0x1664   :  { %v3736_v61 = vpop.f32.mrb[43].mxu0 }
0x1666   :  { %3740 = vmatpush3.bf16.msra.mxu1 %v3908_v28  ;;  %v3913_v28 = vld [vmem:[%s4819_s24] sm:$0xff]  }
0x1667   :  { %3757 = vmatprep.subr.bf16.mxu1 %v3987_v57 }
0x1734   :  { %v2729_v62 = vpop.f32.mrb[52].mxu1 }
0x1735   :  { %v2780_v63 = vadd.f32 %v2779_v58, %v2729_v62  ;;  %v3729_v2 = vpop.f32.mrb[53].mxu1 }
0x1736   :  { %v2732_v5 = vpop.f32.mrb[54].mxu1 }
0x1737   :  { %v2786_v6 = vadd.f32 %v2780_v63, %v4554_v32  ;;  %v2783_v7 = vadd.f32 %v2782_v60, %v2732_v5  ;;  %v3730_v8 = vpop.f32.mrb[55].mxu1  ;;  %v3374_v5 = vld [vmem:[%s4818_s21 + $0x1] ss:$0 sm:$0xff] }
0x1739   :  { %v4719_v9 = vadd.f32 %v3344_v3, %v2786_v6  ;;  %v2787_v10 = vadd.f32 %v2783_v7, %v4557_v34 }
0x173b   :  { %v4722_v11 = vadd.f32 %v3344_v3, %v2787_v10  ;;  %v2802_v12 = vsel %vm628_vm0, %v4719_v9, 0.0 }
0x173c   :  { %2803 = vadd.xlane.f32.xlu0 %v2802_v12 }
0x173d   :  { %v2805_v13 = vsel %vm632_vm1, %v4722_v11, 0.0 }
0x173e   :  { %2806 = vadd.xlane.f32.xlu1 %v2805_v13 }
0x17c9   :  { %v2804_v14 = vpop.xlane.xlu0 %2803 }
0x17ca   :  { %v2808_v16 = vmul.f32 0.03125, %v2804_v14 }
0x17cb   :  { %v2807_v17 = vpop.xlane.xlu1 %2806 }
0x17cc   :  { %v2810_v32 = vsub.f32 %v4719_v9, %v2808_v16  ;;  %v2809_v18 = vmul.f32 0.03125, %v2807_v17 }
0x17ce   :  { %v2811_v19 = vsub.f32 %v4722_v11, %v2809_v18  ;;  %v2812_v20 = vmul.f32 %v2810_v32, %v2810_v32 }
0x17d0   :  { %v2814_v34 = vsel %vm628_vm0, %v2812_v20, 0.0  ;;  %v2813_v21 = vmul.f32 %v2811_v19, %v2811_v19 }
0x17d1   :  { %2815 = vadd.xlane.f32.xlu0 %v2814_v34 }
0x17d2   :  { %v2817_v23 = vsel %vm632_vm1, %v2813_v21, 0.0 }
0x17d3   :  { %2818 = vadd.xlane.f32.xlu1 %v2817_v23 }
0x185e   :  { %v2816_v29 = vpop.xlane.xlu0 %2815 }
0x185f   :  { %v2820_v31 = vmul.f32 0.03125, %v2816_v29  ;;  %v3914_v29 = vld [vmem:[%s4819_s24 + $0x8] sm:$0xff]  }
0x1860   :  { %v2819_v33 = vpop.xlane.xlu1 %2818 }
0x1861   :  { %v2822_v40 = vadd.f32 1e-05, %v2820_v31  ;;  %v2821_v35 = vmul.f32 0.03125, %v2819_v33 }
0x1863   :  { %3971 = vrsqrt.f32 %v2822_v40  ;;  %v2823_v36 = vadd.f32 1e-05, %v2821_v35 }
0x1865   :  { %3973 = vrsqrt.f32 %v2823_v36 }
0x186d   :  { %v3972_v4 = vpop.eup %3971 }
0x186e   :  { %v2826_v37 = vmul.f32 %v3972_v4, %v2810_v32 }
0x186f   :  { %v3974_v24 = vpop.eup %3973 }
0x1870   :  { %v2834_v38 = vmul.f32 %v3347_v44, %v2826_v37  ;;  %v2827_v49 = vmul.f32 %v3974_v24, %v2811_v19  ;;  %v3375_v37 = vld [vmem:[%s4820_s22] ss:$0 sm:$0xff] }
0x1872   :  { %v2835_v41 = vmul.f32 %v3347_v44, %v2827_v49  ;;  %v2842_v27 = vadd.f32 %v3348_v39, %v2834_v38 }
0x1874   :  { %v2843_v22 = vadd.f32 %v3348_v39, %v2835_v41  ;;  %v3376_v39 = vld [vmem:[%s4821_s23] ss:$0 sm:$0xff] }
0x1876   :  { %v2844_v26 = vpack.c.bf16 %v2843_v22, %v2842_v27 }
0x1878   :  { %3742 = vmatmul.mubr.msk.bf16.vlgmr.msra.gmra.mrb[56].mxu1 %vm628_vm0, %v2844_v26 }
0x1879   :  { %3761 = vmatprep.mubr.msk.bf16.mxu1 %vm3988_vm2, %v3987_v57  ;;  %3758 = vmatpush3.bf16.msra.mxu1 %v3913_v28 }
0x187a   :  { %3759 = vmatprep.subr.bf16.mxu1 %v3987_v57 }
0x187d   :  { %3760 = vmatpush3.bf16.msra.mxu1 %v3914_v29 }
0x194b   :  { %v2907_v1 = vpop.f32.mrb[56].mxu1 }
0x194c   :  { %v2908_v45 = vadd.f32 %v3354_v0, %v2907_v1  ;;  %v3743_v46 = vpop.f32.mrb[57].mxu1 }
0x194d   :  { %v2910_v47 = vpop.f32.mrb[58].mxu1 }
0x194e   :  { %v3358_v48 = vmul.f32 -1.702, %v2908_v45  ;;  %v2911_v51 = vadd.f32 %v3354_v0, %v2910_v47  ;;  %v3744_v52 = vpop.f32.mrb[59].mxu1 }
0x1950   :  { %v2918_v30 = vmul.f32 1.442695, %v3358_v48  ;;  %v3359_v53 = vmul.f32 -1.702, %v2911_v51 }
0x1952   :  { %3975 = vpow2.f32 %v2918_v30  ;;  %v2920_v54 = vmul.f32 1.442695, %v3359_v53 }
0x1954   :  { %3977 = vpow2.f32 %v2920_v54 }
0x195c   :  { %v3976_v55 = vpop.eup %3975 }
0x195d   :  { %v2922_v56 = vadd.f32 1.0, %v3976_v55 }
0x195e   :  { %v3978_v58 = vpop.eup %3977 }
0x195f   :  { %3979 = vrcp.f32 %v2922_v56  ;;  %v2923_v59 = vadd.f32 1.0, %v3978_v58 }
0x1961   :  { %3981 = vrcp.f32 %v2923_v59 }
0x1969   :  { %v3980_v60 = vpop.eup %3979 }
0x196a   :  { %v2928_v62 = vmul.f32 %v3980_v60, %v2908_v45 }
0x196b   :  { %v3982_v61 = vpop.eup %3981 }
0x196c   :  { %v2929_v63 = vmul.f32 %v3982_v61, %v2911_v51 }
0x196e   :  { %v2930_v2 = vpack.c.bf16 %v2929_v63, %v2928_v62 }
0x1970   :  { %3754 = vmatmul.mubr.msk.bf16.vlgmr.msra.gmra.mrb[44].mxu0 %vm1786_vm10, %v2930_v2 }
0x1a43   :  { %v3001_v3 = vpop.f32.mrb[44].mxu0 }
0x1a44   :  { %v3008_v6 = vadd.f32 %v3001_v3, %v4719_v9  ;;  %v3755_v7 = vpop.f32.mrb[45].mxu0 }
0x1a45   :  { %v3004_v8 = vpop.f32.mrb[46].mxu0 }
0x1a46   :  { %v3009_v10 = vadd.f32 %v3004_v8, %v4722_v11  ;;  %v3756_v12 = vpop.f32.mrb[47].mxu0  ;;  %v3018_v13 = vadd.f32 %v3374_v5, %v3008_v6 }
0x1a48   :  { %v3022_v14 = vsel %vm628_vm0, %v3018_v13, 0.0  ;;  %v3019_v16 = vadd.f32 %v3374_v5, %v3009_v10 }
0x1a49   :  { %3023 = vadd.xlane.f32.xlu0 %v3022_v14 }
0x1a4a   :  { %v3025_v17 = vsel %vm632_vm1, %v3019_v16, 0.0 }
0x1a4b   :  { %3026 = vadd.xlane.f32.xlu1 %v3025_v17 }
0x1ad6   :  { %v3024_v32 = vpop.xlane.xlu0 %3023 }
0x1ad7   :  { %v3028_v18 = vmul.f32 0.03125, %v3024_v32 }
0x1ad8   :  { %v3027_v19 = vpop.xlane.xlu1 %3026 }
0x1ad9   :  { %v3030_v20 = vsub.f32 %v3018_v13, %v3028_v18  ;;  %v3029_v34 = vmul.f32 0.03125, %v3027_v19 }
0x1adb   :  { %v3031_v21 = vsub.f32 %v3019_v16, %v3029_v34  ;;  %v3032_v9 = vmul.f32 %v3030_v20, %v3030_v20 }
0x1add   :  { %v3034_v23 = vsel %vm628_vm0, %v3032_v9, 0.0  ;;  %v3033_v25 = vmul.f32 %v3031_v21, %v3031_v21 }
0x1ade   :  { %3035 = vadd.xlane.f32.xlu0 %v3034_v23 }
0x1adf   :  { %v3037_v11 = vsel %vm632_vm1, %v3033_v25, 0.0 }
0x1ae0   :  { %3038 = vadd.xlane.f32.xlu1 %v3037_v11 }
0x1b6b   :  { %v3036_v31 = vpop.xlane.xlu0 %3035 }
0x1b6c   :  { %v3040_v33 = vmul.f32 0.03125, %v3036_v31 }
0x1b6d   :  { %v3039_v40 = vpop.xlane.xlu1 %3038 }
0x1b6e   :  { %v3042_v35 = vadd.f32 1e-05, %v3040_v33  ;;  %v3041_v36 = vmul.f32 0.03125, %v3039_v40 }
0x1b70   :  { %3983 = vrsqrt.f32 %v3042_v35  ;;  %v3043_v4 = vadd.f32 1e-05, %v3041_v36 }
0x1b72   :  { %3985 = vrsqrt.f32 %v3043_v4 }
0x1b7a   :  { %v3984_v44 = vpop.eup %3983 }
0x1b7b   :  { %v3046_v24 = vmul.f32 %v3984_v44, %v3030_v20 }
0x1b7c   :  { %v3986_v57 = vpop.eup %3985 }
0x1b7d   :  { %v3054_v38 = vmul.f32 %v3375_v37, %v3046_v24  ;;  %v3047_v49 = vmul.f32 %v3986_v57, %v3031_v21 }
0x1b7f   :  { %v3055_v41 = vmul.f32 %v3375_v37, %v3047_v49  ;;  %v3062_v27 = vadd.f32 %v3376_v39, %v3054_v38 }
0x1b81   :  { %v3063_v22 = vadd.f32 %v3376_v39, %v3055_v41 }
0x1b83   :  { %v3064_v26 = vpack.c.bf16 %v3063_v22, %v3062_v27 }
0x1b85   :  { %3762 = vmatmul.mubr.msk.bf16.vlgmr.msra.gmra.mrb[60].mxu1 %vm628_vm0, %v3064_v26 }
0x1c58   :  { %v3118_v50 = vpop.f32.mrb[60].mxu1 }
0x1c59   :  { %3125 = vst [vmem:[%s4822_s25] sm:$0xff] %v3118_v50  ;;  %v3763_v15 = vpop.f32.mrb[61].mxu1 }
0x1c5a   :  { %v3121_v42 = vpop.f32.mrb[62].mxu1 }
0x1c5b   :  { %3126 = vst [vmem:[%s4822_s25 + $0x8] sm:$0x3] %v3121_v42  ;;  %v3764_v43 = vpop.f32.mrb[63].mxu1 }

</bundles_post_ra>
